<compile_context>
chip_gen: v7x
topology: tpu7x:2x2x1
jax: 0.10.0
libtpu: 0.0.40
codegen_flags: <defaults>
</compile_context>

<pallas_src>
import functools

import jax
import jax.numpy as jnp
from jax.experimental import pallas as pl
from jax.experimental.pallas import tpu as pltpu

PAD = 8          # padding=8 in both Conv1d layers (kernel_size=17)
K_SIZE = 17


def _rows(start, size, stride):
  """Row slice with optional stride (stride==1 uses a plain slice)."""
  return pl.ds(start, size) if stride == 1 else pl.ds(start, size, stride=stride)


def _residual_unit_kernel(
    x_ref, y_ref, w1_ref, w2_ref, ws_ref, vec_ref,      # inputs
    out_x_ref, out_y_ref,                               # outputs
    h1_ref,                                             # VMEM scratch
    *, K, L, ds, TLo, apply_skip_conv):
  f32 = jnp.float32
  Lt = ds * TLo                 # stride-1 conv2 positions covered by the tile
  TL1 = Lt + 2 * PAD            # conv1 rows held (tile + +-8 halo for conv2)

  # ---- conv_1d_1: K shifted-slice matmuls, accumulated ----------------------
  # h1[r] = b1 + sum_k x[r + k] @ W1[k]   (x_ref already carries the +-8 halo
  # for conv1 plus the +-8 halo conv2 needs, so row r+k is always in-tile).
  h1 = jnp.dot(x_ref[0:TL1, :], w1_ref[0], preferred_element_type=f32)
  for k in range(1, K):                       # static tap loop (unrolled)
    h1 = h1 + jnp.dot(x_ref[k:k + TL1, :], w1_ref[k],
                      preferred_element_type=f32)
  h1 = h1 + vec_ref[0:1, :]                   # + b1

  # conv_1d_2 zero-pads the *conv1 output*: rows whose global stride-1 position
  # falls outside [0, L) must be exactly zero (bias included) -> mask them.
  q = (Lt * pl.program_id(1) - PAD
       + jax.lax.broadcasted_iota(jnp.int32, (TL1, 1), 0))
  h1_ref[...] = jnp.where(jnp.logical_and(q >= 0, q < L), h1, 0.0)

  # ---- conv_1d_2 (stride=ds): strided tap reads, one matmul per tap ---------
  x2 = vec_ref[1:2, :] + jnp.dot(h1_ref[_rows(0, TLo, ds), :], w2_ref[0],
                                 preferred_element_type=f32)
  for k in range(1, K):
    x2 = x2 + jnp.dot(h1_ref[_rows(k, TLo, ds), :], w2_ref[k],
                      preferred_element_type=f32)

  # ---- skip connection: MaxPool1d(ds) + optional 1x1 Conv1d -----------------
  yt = y_ref[_rows(0, TLo, ds), :]
  for j in range(1, ds):
    yt = jnp.maximum(yt, y_ref[_rows(j, TLo, ds), :])
  if apply_skip_conv:
    yt = jnp.dot(yt, ws_ref[...], preferred_element_type=f32) + vec_ref[2:3, :]

  # ---- residual add (Dropout == identity at inference) ----------------------
  s = x2 + yt
  out_y_ref[...] = s.astype(out_y_ref.dtype)

  # ---- BatchNorm1d (inference, folded scale/shift) + ReLU -------------------
  xb = s * vec_ref[3:4, :] + vec_ref[4:5, :]
  out_x_ref[...] = jnp.maximum(xb, 0.0).astype(out_x_ref.dtype)


def _pick_tile(l_out, max_tile=256):
  """Largest multiple-of-8 divisor of l_out that is <= max_tile (else l_out)."""
  if l_out <= max_tile:
    return l_out
  t = (max_tile // 8) * 8
  while t >= 8:
    if l_out % t == 0:
      return t
    t -= 8
  return l_out


def residual_unit_forward(x, y, params, *, down_sample, kernel_size=17,
                          eps=1e-5, tile_out=None):
  """x, y: (N, C_in, L) float32, PyTorch NCL layout. Returns (out_x, out_y) NCL."""
  assert kernel_size == K_SIZE, "padding=8 in the module implies kernel_size=17"
  N, C_in, L = x.shape
  K = kernel_size
  ds = down_sample
  C_out = params['w1'].shape[0]
  assert ds >= 1 and L % ds == 0, "down_sample must divide L"
  L_out = L // ds

  TLo = _pick_tile(L_out) if tile_out is None else tile_out
  assert L_out % TLo == 0 and (TLo % 8 == 0 or TLo == L_out)
  nT = L_out // TLo
  Lt = ds * TLo                 # stride-1 rows per tile
  TL1 = Lt + 2 * PAD            # conv1 rows per tile (incl. conv2 halo)
  TIN = TL1 + 2 * PAD           # x rows per tile (incl. conv1 halo)

  f32 = jnp.float32
  x_nlc = jnp.transpose(x, (0, 2, 1)).astype(f32)
  y_nlc = jnp.transpose(y, (0, 2, 1)).astype(f32)

  # Pre-pad x (8 for conv1 + 8 for conv2's halo) and cut overlapping L-tiles in
  # the wrapper (layout plumbing) so the kernel uses plain BlockSpecs.
  x_pad = jnp.pad(x_nlc, ((0, 0), (2 * PAD, 2 * PAD), (0, 0)))
  x_tiles = jnp.stack([x_pad[:, i * Lt:i * Lt + TIN, :] for i in range(nT)],
                      axis=1)                                 # (N, nT, TIN, C_in)

  # weights: PyTorch (C_out, C_in, K) -> tap-major (K, C_in, C_out) so the
  # kernel can index one (C_in, C_out) tap slab with a static leading index.
  w1 = jnp.transpose(params['w1'], (2, 1, 0)).astype(f32)     # (K, C_in, C_out)
  w2 = jnp.transpose(params['w2'], (2, 1, 0)).astype(f32)     # (K, C_out, C_out)
  ws = jnp.transpose(params['ws'][:, :, 0], (1, 0)).astype(f32)    # (C_in, C_out)

  # BatchNorm folded to scale/shift in the wrapper (inference, running stats).
  scale = (params['gamma'] * jax.lax.rsqrt(params['var'] + eps)).astype(f32)
  shift = (params['beta'] - params['mean'] * scale).astype(f32)

  # All per-channel vectors packed into ONE (8, C_out) VMEM operand:
  # rows = [b1, b2, bs, bn_scale, bn_shift, 0, 0, 0]
  zeros = jnp.zeros((C_out,), f32)
  vecs = jnp.stack([params['b1'], params['b2'], params['bs'],
                    scale, shift, zeros, zeros, zeros]).astype(f32)

  kernel = functools.partial(
      _residual_unit_kernel,
      K=K, L=L, ds=ds, TLo=TLo, apply_skip_conv=(C_in != C_out))

  full = lambda shape: pl.BlockSpec(shape, lambda n, i: (0,) * len(shape))

  out_x, out_y = pl.pallas_call(
      kernel,
      grid=(N, nT),
      in_specs=[
          pl.BlockSpec((None, None, TIN, C_in), lambda n, i: (n, i, 0, 0)),
          pl.BlockSpec((None, Lt, C_in), lambda n, i: (n, i, 0)),
          full((K, C_in, C_out)),
          full((K, C_out, C_out)),
          full((C_in, C_out)),
          full((8, C_out)),
      ],
      out_specs=(pl.BlockSpec((None, TLo, C_out), lambda n, i: (n, i, 0)),
                 pl.BlockSpec((None, TLo, C_out), lambda n, i: (n, i, 0))),
      out_shape=(jax.ShapeDtypeStruct((N, L_out, C_out), f32),
                 jax.ShapeDtypeStruct((N, L_out, C_out), f32)),
      scratch_shapes=[pltpu.VMEM((TL1, C_out), f32)],         # masked conv1 out
      compiler_params=pltpu.CompilerParams(
          dimension_semantics=("parallel", "parallel"),
          vmem_limit_bytes=48 * 1024 * 1024),
  )(x_tiles, y_nlc, w1, w2, ws, vecs)

  # back to PyTorch NCL layout
  return jnp.transpose(out_x, (0, 2, 1)), jnp.transpose(out_y, (0, 2, 1))


def _reference_forward(x, y, params, *, down_sample, eps=1e-5):
  """Pure-JAX (XLA) reference mirroring the PyTorch forward (inference mode)."""
  ds = down_sample
  hi = jax.lax.Precision.HIGHEST

  def conv1d(inp, w, b, stride, pad):
    out = jax.lax.conv_general_dilated(
        inp, w, window_strides=(stride,), padding=[(pad, pad)],
        dimension_numbers=('NCH', 'OIH', 'NCH'), precision=hi)
    return out + b[None, :, None]

  ys = y
  if ds > 1:
    ys = jax.lax.reduce_window(ys, -jnp.inf, jax.lax.max,
                               (1, 1, ds), (1, 1, ds), 'VALID')
  if params['w1'].shape[1] != params['w1'].shape[0]:   # C_in != C_out
    ys = conv1d(ys, params['ws'], params['bs'], 1, 0)

  x1 = conv1d(x, params['w1'], params['b1'], 1, PAD)
  x2 = conv1d(x1, params['w2'], params['b2'], ds, PAD)
  s = x2 + ys
  c = (1, -1, 1)
  xb = ((s - params['mean'].reshape(c))
        * jax.lax.rsqrt(params['var'].reshape(c) + eps)
        * params['gamma'].reshape(c) + params['beta'].reshape(c))
  return jnp.maximum(xb, 0.0), s


if __name__ == "__main__":
  base_key = jax.random.PRNGKey(0)

  def run_case(case_id, N, C_in, C_out, L, ds, tile_out):
    ks = jax.random.split(jax.random.fold_in(base_key, case_id), 12)
    params = {
        'w1':    0.1 * jax.random.normal(ks[0], (C_out, C_in, K_SIZE), jnp.float32),
        'b1':    0.1 * jax.random.normal(ks[1], (C_out,), jnp.float32),
        'w2':    0.1 * jax.random.normal(ks[2], (C_out, C_out, K_SIZE), jnp.float32),
        'b2':    0.1 * jax.random.normal(ks[3], (C_out,), jnp.float32),
        'ws':    0.1 * jax.random.normal(ks[4], (C_out, C_in, 1), jnp.float32),
        'bs':    0.1 * jax.random.normal(ks[5], (C_out,), jnp.float32),
        'gamma': 1.0 + 0.1 * jax.random.normal(ks[6], (C_out,), jnp.float32),
        'beta':  0.1 * jax.random.normal(ks[7], (C_out,), jnp.float32),
        'mean':  0.1 * jax.random.normal(ks[8], (C_out,), jnp.float32),
        'var':   jnp.abs(1.0 + 0.1 * jax.random.normal(ks[9], (C_out,), jnp.float32)),
    }
    x = jax.random.normal(ks[10], (N, C_in, L), jnp.float32)
    y = jax.random.normal(ks[11], (N, C_in, L), jnp.float32)

    out_x, out_y = residual_unit_forward(x, y, params, down_sample=ds,
                                         tile_out=tile_out)
    jax.block_until_ready((out_x, out_y))

    ref_x, ref_y = _reference_forward(x, y, params, down_sample=ds)
    assert out_x.shape == (N, C_out, L // ds), out_x.shape
    assert out_y.shape == (N, C_out, L // ds), out_y.shape
    assert jnp.allclose(out_x, ref_x, rtol=1e-2, atol=1e-2), \
        float(jnp.max(jnp.abs(out_x - ref_x)))
    assert jnp.allclose(out_y, ref_y, rtol=1e-2, atol=1e-2), \
        float(jnp.max(jnp.abs(out_y - ref_y)))

  # down_sample=2 with channel expansion (maxpool + 1x1 skip conv), 2 L-tiles
  run_case(0, N=2, C_in=4, C_out=8, L=32, ds=2, tile_out=8)
  # down_sample=1 with identity skip, 2 L-tiles
  run_case(1, N=2, C_in=8, C_out=8, L=16, ds=1, tile_out=8)

  print("KERNEL_OK")
</pallas_src>

<mosaic_0001>
module attributes {stable_mosaic.version = 11 : i64} {
  func.func @_residual_unit_kernel(%arg0: i32, %arg1: i32, %arg2: memref<1x1x48x4xf32, #tpu.memory_space<vmem>>, %arg3: memref<1x16x4xf32, #tpu.memory_space<vmem>>, %arg4: memref<17x4x8xf32, #tpu.memory_space<vmem>>, %arg5: memref<17x8x8xf32, #tpu.memory_space<vmem>>, %arg6: memref<4x8xf32, #tpu.memory_space<vmem>>, %arg7: memref<8x8xf32, #tpu.memory_space<vmem>>, %arg8: memref<1x8x8xf32, #tpu.memory_space<vmem>>, %arg9: memref<1x8x8xf32, #tpu.memory_space<vmem>>, %arg10: memref<32x8xf32, #tpu.memory_space<vmem>>) attributes {dimension_semantics = [#tpu.dimension_semantics<parallel>, #tpu.dimension_semantics<parallel>], iteration_bounds = array<i64: 2, 2>, scalar_prefetch = 0 : i64, scratch_operands = 1 : i64, tpu.core_type = #tpu.core_type<tc>, window_params = [{transform_indices = @transform_0, window_bounds = array<i64: 1, 1, 48, 4>}, {transform_indices = @transform_1, window_bounds = array<i64: 1, 16, 4>}, {pipeline_mode = #tpu.pipeline_mode<synchronous>, transform_indices = @transform_2, window_bounds = array<i64: 17, 4, 8>}, {pipeline_mode = #tpu.pipeline_mode<synchronous>, transform_indices = @transform_3, window_bounds = array<i64: 17, 8, 8>}, {pipeline_mode = #tpu.pipeline_mode<synchronous>, transform_indices = @transform_4, window_bounds = array<i64: 4, 8>}, {pipeline_mode = #tpu.pipeline_mode<synchronous>, transform_indices = @transform_5, window_bounds = array<i64: 8, 8>}, {transform_indices = @transform_6, window_bounds = array<i64: 1, 8, 8>}, {transform_indices = @transform_7, window_bounds = array<i64: 1, 8, 8>}]} {
    %c0 = arith.constant 0 : index
    %c0_0 = arith.constant 0 : index
    %c0_1 = arith.constant 0 : index
    %c0_2 = arith.constant 0 : index
    %0 = vector.load %arg2[%c0, %c0_0, %c0_1, %c0_2] : memref<1x1x48x4xf32, #tpu.memory_space<vmem>>, vector<1x1x32x4xf32>
    %1 = vector.shape_cast %0 : vector<1x1x32x4xf32> to vector<32x4xf32>
    %c0_3 = arith.constant 0 : index
    %c0_4 = arith.constant 0 : index
    %c0_5 = arith.constant 0 : index
    %2 = vector.load %arg4[%c0_3, %c0_4, %c0_5] : memref<17x4x8xf32, #tpu.memory_space<vmem>>, vector<1x4x8xf32>
    %3 = vector.shape_cast %2 : vector<1x4x8xf32> to vector<4x8xf32>
    %cst = arith.constant dense<0.000000e+00> : vector<32x8xf32>
    %4 = tpu.matmul %1, %3, %cst {dimension_numbers = #tpu.dot_dimension_numbers<[1], [0], [0], [1], [0, 0, 1, 1], [], []>} : vector<32x4xf32>, vector<4x8xf32>, vector<32x8xf32> -> vector<32x8xf32>
    %c0_6 = arith.constant 0 : index
    %c0_7 = arith.constant 0 : index
    %c1 = arith.constant 1 : index
    %c0_8 = arith.constant 0 : index
    %5 = vector.load %arg2[%c0_6, %c0_7, %c1, %c0_8] : memref<1x1x48x4xf32, #tpu.memory_space<vmem>>, vector<1x1x32x4xf32>
    %6 = vector.shape_cast %5 : vector<1x1x32x4xf32> to vector<32x4xf32>
    %c1_9 = arith.constant 1 : index
    %c0_10 = arith.constant 0 : index
    %c0_11 = arith.constant 0 : index
    %7 = vector.load %arg4[%c1_9, %c0_10, %c0_11] : memref<17x4x8xf32, #tpu.memory_space<vmem>>, vector<1x4x8xf32>
    %8 = vector.shape_cast %7 : vector<1x4x8xf32> to vector<4x8xf32>
    %cst_12 = arith.constant dense<0.000000e+00> : vector<32x8xf32>
    %9 = tpu.matmul %6, %8, %cst_12 {dimension_numbers = #tpu.dot_dimension_numbers<[1], [0], [0], [1], [0, 0, 1, 1], [], []>} : vector<32x4xf32>, vector<4x8xf32>, vector<32x8xf32> -> vector<32x8xf32>
    %10 = arith.addf %4, %9 : vector<32x8xf32>
    %c0_13 = arith.constant 0 : index
    %c0_14 = arith.constant 0 : index
    %c2 = arith.constant 2 : index
    %c0_15 = arith.constant 0 : index
    %11 = vector.load %arg2[%c0_13, %c0_14, %c2, %c0_15] : memref<1x1x48x4xf32, #tpu.memory_space<vmem>>, vector<1x1x32x4xf32>
    %12 = vector.shape_cast %11 : vector<1x1x32x4xf32> to vector<32x4xf32>
    %c2_16 = arith.constant 2 : index
    %c0_17 = arith.constant 0 : index
    %c0_18 = arith.constant 0 : index
    %13 = vector.load %arg4[%c2_16, %c0_17, %c0_18] : memref<17x4x8xf32, #tpu.memory_space<vmem>>, vector<1x4x8xf32>
    %14 = vector.shape_cast %13 : vector<1x4x8xf32> to vector<4x8xf32>
    %cst_19 = arith.constant dense<0.000000e+00> : vector<32x8xf32>
    %15 = tpu.matmul %12, %14, %cst_19 {dimension_numbers = #tpu.dot_dimension_numbers<[1], [0], [0], [1], [0, 0, 1, 1], [], []>} : vector<32x4xf32>, vector<4x8xf32>, vector<32x8xf32> -> vector<32x8xf32>
    %16 = arith.addf %10, %15 : vector<32x8xf32>
    %c0_20 = arith.constant 0 : index
    %c0_21 = arith.constant 0 : index
    %c3 = arith.constant 3 : index
    %c0_22 = arith.constant 0 : index
    %17 = vector.load %arg2[%c0_20, %c0_21, %c3, %c0_22] : memref<1x1x48x4xf32, #tpu.memory_space<vmem>>, vector<1x1x32x4xf32>
    %18 = vector.shape_cast %17 : vector<1x1x32x4xf32> to vector<32x4xf32>
    %c3_23 = arith.constant 3 : index
    %c0_24 = arith.constant 0 : index
    %c0_25 = arith.constant 0 : index
    %19 = vector.load %arg4[%c3_23, %c0_24, %c0_25] : memref<17x4x8xf32, #tpu.memory_space<vmem>>, vector<1x4x8xf32>
    %20 = vector.shape_cast %19 : vector<1x4x8xf32> to vector<4x8xf32>
    %cst_26 = arith.constant dense<0.000000e+00> : vector<32x8xf32>
    %21 = tpu.matmul %18, %20, %cst_26 {dimension_numbers = #tpu.dot_dimension_numbers<[1], [0], [0], [1], [0, 0, 1, 1], [], []>} : vector<32x4xf32>, vector<4x8xf32>, vector<32x8xf32> -> vector<32x8xf32>
    %22 = arith.addf %16, %21 : vector<32x8xf32>
    %c0_27 = arith.constant 0 : index
    %c0_28 = arith.constant 0 : index
    %c4 = arith.constant 4 : index
    %c0_29 = arith.constant 0 : index
    %23 = vector.load %arg2[%c0_27, %c0_28, %c4, %c0_29] : memref<1x1x48x4xf32, #tpu.memory_space<vmem>>, vector<1x1x32x4xf32>
    %24 = vector.shape_cast %23 : vector<1x1x32x4xf32> to vector<32x4xf32>
    %c4_30 = arith.constant 4 : index
    %c0_31 = arith.constant 0 : index
    %c0_32 = arith.constant 0 : index
    %25 = vector.load %arg4[%c4_30, %c0_31, %c0_32] : memref<17x4x8xf32, #tpu.memory_space<vmem>>, vector<1x4x8xf32>
    %26 = vector.shape_cast %25 : vector<1x4x8xf32> to vector<4x8xf32>
    %cst_33 = arith.constant dense<0.000000e+00> : vector<32x8xf32>
    %27 = tpu.matmul %24, %26, %cst_33 {dimension_numbers = #tpu.dot_dimension_numbers<[1], [0], [0], [1], [0, 0, 1, 1], [], []>} : vector<32x4xf32>, vector<4x8xf32>, vector<32x8xf32> -> vector<32x8xf32>
    %28 = arith.addf %22, %27 : vector<32x8xf32>
    %c0_34 = arith.constant 0 : index
    %c0_35 = arith.constant 0 : index
    %c5 = arith.constant 5 : index
    %c0_36 = arith.constant 0 : index
    %29 = vector.load %arg2[%c0_34, %c0_35, %c5, %c0_36] : memref<1x1x48x4xf32, #tpu.memory_space<vmem>>, vector<1x1x32x4xf32>
    %30 = vector.shape_cast %29 : vector<1x1x32x4xf32> to vector<32x4xf32>
    %c5_37 = arith.constant 5 : index
    %c0_38 = arith.constant 0 : index
    %c0_39 = arith.constant 0 : index
    %31 = vector.load %arg4[%c5_37, %c0_38, %c0_39] : memref<17x4x8xf32, #tpu.memory_space<vmem>>, vector<1x4x8xf32>
    %32 = vector.shape_cast %31 : vector<1x4x8xf32> to vector<4x8xf32>
    %cst_40 = arith.constant dense<0.000000e+00> : vector<32x8xf32>
    %33 = tpu.matmul %30, %32, %cst_40 {dimension_numbers = #tpu.dot_dimension_numbers<[1], [0], [0], [1], [0, 0, 1, 1], [], []>} : vector<32x4xf32>, vector<4x8xf32>, vector<32x8xf32> -> vector<32x8xf32>
    %34 = arith.addf %28, %33 : vector<32x8xf32>
    %c0_41 = arith.constant 0 : index
    %c0_42 = arith.constant 0 : index
    %c6 = arith.constant 6 : index
    %c0_43 = arith.constant 0 : index
    %35 = vector.load %arg2[%c0_41, %c0_42, %c6, %c0_43] : memref<1x1x48x4xf32, #tpu.memory_space<vmem>>, vector<1x1x32x4xf32>
    %36 = vector.shape_cast %35 : vector<1x1x32x4xf32> to vector<32x4xf32>
    %c6_44 = arith.constant 6 : index
    %c0_45 = arith.constant 0 : index
    %c0_46 = arith.constant 0 : index
    %37 = vector.load %arg4[%c6_44, %c0_45, %c0_46] : memref<17x4x8xf32, #tpu.memory_space<vmem>>, vector<1x4x8xf32>
    %38 = vector.shape_cast %37 : vector<1x4x8xf32> to vector<4x8xf32>
    %cst_47 = arith.constant dense<0.000000e+00> : vector<32x8xf32>
    %39 = tpu.matmul %36, %38, %cst_47 {dimension_numbers = #tpu.dot_dimension_numbers<[1], [0], [0], [1], [0, 0, 1, 1], [], []>} : vector<32x4xf32>, vector<4x8xf32>, vector<32x8xf32> -> vector<32x8xf32>
    %40 = arith.addf %34, %39 : vector<32x8xf32>
    %c0_48 = arith.constant 0 : index
    %c0_49 = arith.constant 0 : index
    %c7 = arith.constant 7 : index
    %c0_50 = arith.constant 0 : index
    %41 = vector.load %arg2[%c0_48, %c0_49, %c7, %c0_50] : memref<1x1x48x4xf32, #tpu.memory_space<vmem>>, vector<1x1x32x4xf32>
    %42 = vector.shape_cast %41 : vector<1x1x32x4xf32> to vector<32x4xf32>
    %c7_51 = arith.constant 7 : index
    %c0_52 = arith.constant 0 : index
    %c0_53 = arith.constant 0 : index
    %43 = vector.load %arg4[%c7_51, %c0_52, %c0_53] : memref<17x4x8xf32, #tpu.memory_space<vmem>>, vector<1x4x8xf32>
    %44 = vector.shape_cast %43 : vector<1x4x8xf32> to vector<4x8xf32>
    %cst_54 = arith.constant dense<0.000000e+00> : vector<32x8xf32>
    %45 = tpu.matmul %42, %44, %cst_54 {dimension_numbers = #tpu.dot_dimension_numbers<[1], [0], [0], [1], [0, 0, 1, 1], [], []>} : vector<32x4xf32>, vector<4x8xf32>, vector<32x8xf32> -> vector<32x8xf32>
    %46 = arith.addf %40, %45 : vector<32x8xf32>
    %c0_55 = arith.constant 0 : index
    %c0_56 = arith.constant 0 : index
    %c8 = arith.constant 8 : index
    %c0_57 = arith.constant 0 : index
    %47 = vector.load %arg2[%c0_55, %c0_56, %c8, %c0_57] : memref<1x1x48x4xf32, #tpu.memory_space<vmem>>, vector<1x1x32x4xf32>
    %48 = vector.shape_cast %47 : vector<1x1x32x4xf32> to vector<32x4xf32>
    %c8_58 = arith.constant 8 : index
    %c0_59 = arith.constant 0 : index
    %c0_60 = arith.constant 0 : index
    %49 = vector.load %arg4[%c8_58, %c0_59, %c0_60] : memref<17x4x8xf32, #tpu.memory_space<vmem>>, vector<1x4x8xf32>
    %50 = vector.shape_cast %49 : vector<1x4x8xf32> to vector<4x8xf32>
    %cst_61 = arith.constant dense<0.000000e+00> : vector<32x8xf32>
    %51 = tpu.matmul %48, %50, %cst_61 {dimension_numbers = #tpu.dot_dimension_numbers<[1], [0], [0], [1], [0, 0, 1, 1], [], []>} : vector<32x4xf32>, vector<4x8xf32>, vector<32x8xf32> -> vector<32x8xf32>
    %52 = arith.addf %46, %51 : vector<32x8xf32>
    %c0_62 = arith.constant 0 : index
    %c0_63 = arith.constant 0 : index
    %c9 = arith.constant 9 : index
    %c0_64 = arith.constant 0 : index
    %53 = vector.load %arg2[%c0_62, %c0_63, %c9, %c0_64] : memref<1x1x48x4xf32, #tpu.memory_space<vmem>>, vector<1x1x32x4xf32>
    %54 = vector.shape_cast %53 : vector<1x1x32x4xf32> to vector<32x4xf32>
    %c9_65 = arith.constant 9 : index
    %c0_66 = arith.constant 0 : index
    %c0_67 = arith.constant 0 : index
    %55 = vector.load %arg4[%c9_65, %c0_66, %c0_67] : memref<17x4x8xf32, #tpu.memory_space<vmem>>, vector<1x4x8xf32>
    %56 = vector.shape_cast %55 : vector<1x4x8xf32> to vector<4x8xf32>
    %cst_68 = arith.constant dense<0.000000e+00> : vector<32x8xf32>
    %57 = tpu.matmul %54, %56, %cst_68 {dimension_numbers = #tpu.dot_dimension_numbers<[1], [0], [0], [1], [0, 0, 1, 1], [], []>} : vector<32x4xf32>, vector<4x8xf32>, vector<32x8xf32> -> vector<32x8xf32>
    %58 = arith.addf %52, %57 : vector<32x8xf32>
    %c0_69 = arith.constant 0 : index
    %c0_70 = arith.constant 0 : index
    %c10 = arith.constant 10 : index
    %c0_71 = arith.constant 0 : index
    %59 = vector.load %arg2[%c0_69, %c0_70, %c10, %c0_71] : memref<1x1x48x4xf32, #tpu.memory_space<vmem>>, vector<1x1x32x4xf32>
    %60 = vector.shape_cast %59 : vector<1x1x32x4xf32> to vector<32x4xf32>
    %c10_72 = arith.constant 10 : index
    %c0_73 = arith.constant 0 : index
    %c0_74 = arith.constant 0 : index
    %61 = vector.load %arg4[%c10_72, %c0_73, %c0_74] : memref<17x4x8xf32, #tpu.memory_space<vmem>>, vector<1x4x8xf32>
    %62 = vector.shape_cast %61 : vector<1x4x8xf32> to vector<4x8xf32>
    %cst_75 = arith.constant dense<0.000000e+00> : vector<32x8xf32>
    %63 = tpu.matmul %60, %62, %cst_75 {dimension_numbers = #tpu.dot_dimension_numbers<[1], [0], [0], [1], [0, 0, 1, 1], [], []>} : vector<32x4xf32>, vector<4x8xf32>, vector<32x8xf32> -> vector<32x8xf32>
    %64 = arith.addf %58, %63 : vector<32x8xf32>
    %c0_76 = arith.constant 0 : index
    %c0_77 = arith.constant 0 : index
    %c11 = arith.constant 11 : index
    %c0_78 = arith.constant 0 : index
    %65 = vector.load %arg2[%c0_76, %c0_77, %c11, %c0_78] : memref<1x1x48x4xf32, #tpu.memory_space<vmem>>, vector<1x1x32x4xf32>
    %66 = vector.shape_cast %65 : vector<1x1x32x4xf32> to vector<32x4xf32>
    %c11_79 = arith.constant 11 : index
    %c0_80 = arith.constant 0 : index
    %c0_81 = arith.constant 0 : index
    %67 = vector.load %arg4[%c11_79, %c0_80, %c0_81] : memref<17x4x8xf32, #tpu.memory_space<vmem>>, vector<1x4x8xf32>
    %68 = vector.shape_cast %67 : vector<1x4x8xf32> to vector<4x8xf32>
    %cst_82 = arith.constant dense<0.000000e+00> : vector<32x8xf32>
    %69 = tpu.matmul %66, %68, %cst_82 {dimension_numbers = #tpu.dot_dimension_numbers<[1], [0], [0], [1], [0, 0, 1, 1], [], []>} : vector<32x4xf32>, vector<4x8xf32>, vector<32x8xf32> -> vector<32x8xf32>
    %70 = arith.addf %64, %69 : vector<32x8xf32>
    %c0_83 = arith.constant 0 : index
    %c0_84 = arith.constant 0 : index
    %c12 = arith.constant 12 : index
    %c0_85 = arith.constant 0 : index
    %71 = vector.load %arg2[%c0_83, %c0_84, %c12, %c0_85] : memref<1x1x48x4xf32, #tpu.memory_space<vmem>>, vector<1x1x32x4xf32>
    %72 = vector.shape_cast %71 : vector<1x1x32x4xf32> to vector<32x4xf32>
    %c12_86 = arith.constant 12 : index
    %c0_87 = arith.constant 0 : index
    %c0_88 = arith.constant 0 : index
    %73 = vector.load %arg4[%c12_86, %c0_87, %c0_88] : memref<17x4x8xf32, #tpu.memory_space<vmem>>, vector<1x4x8xf32>
    %74 = vector.shape_cast %73 : vector<1x4x8xf32> to vector<4x8xf32>
    %cst_89 = arith.constant dense<0.000000e+00> : vector<32x8xf32>
    %75 = tpu.matmul %72, %74, %cst_89 {dimension_numbers = #tpu.dot_dimension_numbers<[1], [0], [0], [1], [0, 0, 1, 1], [], []>} : vector<32x4xf32>, vector<4x8xf32>, vector<32x8xf32> -> vector<32x8xf32>
    %76 = arith.addf %70, %75 : vector<32x8xf32>
    %c0_90 = arith.constant 0 : index
    %c0_91 = arith.constant 0 : index
    %c13 = arith.constant 13 : index
    %c0_92 = arith.constant 0 : index
    %77 = vector.load %arg2[%c0_90, %c0_91, %c13, %c0_92] : memref<1x1x48x4xf32, #tpu.memory_space<vmem>>, vector<1x1x32x4xf32>
    %78 = vector.shape_cast %77 : vector<1x1x32x4xf32> to vector<32x4xf32>
    %c13_93 = arith.constant 13 : index
    %c0_94 = arith.constant 0 : index
    %c0_95 = arith.constant 0 : index
    %79 = vector.load %arg4[%c13_93, %c0_94, %c0_95] : memref<17x4x8xf32, #tpu.memory_space<vmem>>, vector<1x4x8xf32>
    %80 = vector.shape_cast %79 : vector<1x4x8xf32> to vector<4x8xf32>
    %cst_96 = arith.constant dense<0.000000e+00> : vector<32x8xf32>
    %81 = tpu.matmul %78, %80, %cst_96 {dimension_numbers = #tpu.dot_dimension_numbers<[1], [0], [0], [1], [0, 0, 1, 1], [], []>} : vector<32x4xf32>, vector<4x8xf32>, vector<32x8xf32> -> vector<32x8xf32>
    %82 = arith.addf %76, %81 : vector<32x8xf32>
    %c0_97 = arith.constant 0 : index
    %c0_98 = arith.constant 0 : index
    %c14 = arith.constant 14 : index
    %c0_99 = arith.constant 0 : index
    %83 = vector.load %arg2[%c0_97, %c0_98, %c14, %c0_99] : memref<1x1x48x4xf32, #tpu.memory_space<vmem>>, vector<1x1x32x4xf32>
    %84 = vector.shape_cast %83 : vector<1x1x32x4xf32> to vector<32x4xf32>
    %c14_100 = arith.constant 14 : index
    %c0_101 = arith.constant 0 : index
    %c0_102 = arith.constant 0 : index
    %85 = vector.load %arg4[%c14_100, %c0_101, %c0_102] : memref<17x4x8xf32, #tpu.memory_space<vmem>>, vector<1x4x8xf32>
    %86 = vector.shape_cast %85 : vector<1x4x8xf32> to vector<4x8xf32>
    %cst_103 = arith.constant dense<0.000000e+00> : vector<32x8xf32>
    %87 = tpu.matmul %84, %86, %cst_103 {dimension_numbers = #tpu.dot_dimension_numbers<[1], [0], [0], [1], [0, 0, 1, 1], [], []>} : vector<32x4xf32>, vector<4x8xf32>, vector<32x8xf32> -> vector<32x8xf32>
    %88 = arith.addf %82, %87 : vector<32x8xf32>
    %c0_104 = arith.constant 0 : index
    %c0_105 = arith.constant 0 : index
    %c15 = arith.constant 15 : index
    %c0_106 = arith.constant 0 : index
    %89 = vector.load %arg2[%c0_104, %c0_105, %c15, %c0_106] : memref<1x1x48x4xf32, #tpu.memory_space<vmem>>, vector<1x1x32x4xf32>
    %90 = vector.shape_cast %89 : vector<1x1x32x4xf32> to vector<32x4xf32>
    %c15_107 = arith.constant 15 : index
    %c0_108 = arith.constant 0 : index
    %c0_109 = arith.constant 0 : index
    %91 = vector.load %arg4[%c15_107, %c0_108, %c0_109] : memref<17x4x8xf32, #tpu.memory_space<vmem>>, vector<1x4x8xf32>
    %92 = vector.shape_cast %91 : vector<1x4x8xf32> to vector<4x8xf32>
    %cst_110 = arith.constant dense<0.000000e+00> : vector<32x8xf32>
    %93 = tpu.matmul %90, %92, %cst_110 {dimension_numbers = #tpu.dot_dimension_numbers<[1], [0], [0], [1], [0, 0, 1, 1], [], []>} : vector<32x4xf32>, vector<4x8xf32>, vector<32x8xf32> -> vector<32x8xf32>
    %94 = arith.addf %88, %93 : vector<32x8xf32>
    %c0_111 = arith.constant 0 : index
    %c0_112 = arith.constant 0 : index
    %c16 = arith.constant 16 : index
    %c0_113 = arith.constant 0 : index
    %95 = vector.load %arg2[%c0_111, %c0_112, %c16, %c0_113] : memref<1x1x48x4xf32, #tpu.memory_space<vmem>>, vector<1x1x32x4xf32>
    %96 = vector.shape_cast %95 : vector<1x1x32x4xf32> to vector<32x4xf32>
    %c16_114 = arith.constant 16 : index
    %c0_115 = arith.constant 0 : index
    %c0_116 = arith.constant 0 : index
    %97 = vector.load %arg4[%c16_114, %c0_115, %c0_116] : memref<17x4x8xf32, #tpu.memory_space<vmem>>, vector<1x4x8xf32>
    %98 = vector.shape_cast %97 : vector<1x4x8xf32> to vector<4x8xf32>
    %cst_117 = arith.constant dense<0.000000e+00> : vector<32x8xf32>
    %99 = tpu.matmul %96, %98, %cst_117 {dimension_numbers = #tpu.dot_dimension_numbers<[1], [0], [0], [1], [0, 0, 1, 1], [], []>} : vector<32x4xf32>, vector<4x8xf32>, vector<32x8xf32> -> vector<32x8xf32>
    %100 = arith.addf %94, %99 : vector<32x8xf32>
    %c0_118 = arith.constant 0 : index
    %c0_119 = arith.constant 0 : index
    %101 = vector.load %arg7[%c0_118, %c0_119] : memref<8x8xf32, #tpu.memory_space<vmem>>, vector<1x8xf32>
    %102 = vector.broadcast %101 : vector<1x8xf32> to vector<32x8xf32>
    %103 = arith.addf %100, %102 : vector<32x8xf32>
    %c16_i32 = arith.constant 16 : i32
    %104 = arith.muli %c16_i32, %arg1 : i32
    %c8_i32 = arith.constant 8 : i32
    %105 = arith.subi %104, %c8_i32 : i32
    %106 = tpu.iota {dimensions = array<i32: 0>} : vector<32x1xi32>
    %107 = vector.broadcast %105 : i32 to vector<32x1xi32>
    %108 = arith.addi %107, %106 : vector<32x1xi32>
    %c0_i32 = arith.constant 0 : i32
    %109 = vector.broadcast %c0_i32 : i32 to vector<32x1xi32>
    %110 = arith.cmpi sge, %108, %109 : vector<32x1xi32>
    %c32_i32 = arith.constant 32 : i32
    %111 = vector.broadcast %c32_i32 : i32 to vector<32x1xi32>
    %112 = arith.cmpi slt, %108, %111 : vector<32x1xi32>
    %113 = arith.andi %110, %112 : vector<32x1xi1>
    %cst_120 = arith.constant 0.000000e+00 : f32
    %114 = vector.shape_cast %113 : vector<32x1xi1> to vector<32x1xi1>
    %115 = vector.broadcast %114 : vector<32x1xi1> to vector<32x8xi1>
    %116 = vector.broadcast %cst_120 : f32 to vector<32x8xf32>
    %117 = arith.select %115, %103, %116 : vector<32x8xi1>, vector<32x8xf32>
    %c0_121 = arith.constant 0 : index
    %c0_122 = arith.constant 0 : index
    %118 = vector.load %arg10[%c0_121, %c0_122] : memref<32x8xf32, #tpu.memory_space<vmem>>, vector<32x8xf32>
    tpu.vector_store %arg10[%c0_121, %c0_122], %117 {strides = array<i32>} : memref<32x8xf32, #tpu.memory_space<vmem>>, vector<32x8xf32>,
    %c1_123 = arith.constant 1 : index
    %c0_124 = arith.constant 0 : index
    %119 = vector.load %arg7[%c1_123, %c0_124] : memref<8x8xf32, #tpu.memory_space<vmem>>, vector<1x8xf32>
    %c0_125 = arith.constant 0 : index
    %c0_126 = arith.constant 0 : index
    %120 = tpu.strided_load %arg10[%c0_125, %c0_126] {strides = array<i32: 2, 1>} : memref<32x8xf32, #tpu.memory_space<vmem>>, vector<8x8xf32>
    %c0_127 = arith.constant 0 : index
    %c0_128 = arith.constant 0 : index
    %c0_129 = arith.constant 0 : index
    %121 = vector.load %arg5[%c0_127, %c0_128, %c0_129] : memref<17x8x8xf32, #tpu.memory_space<vmem>>, vector<1x8x8xf32>
    %122 = vector.shape_cast %121 : vector<1x8x8xf32> to vector<8x8xf32>
    %cst_130 = arith.constant dense<0.000000e+00> : vector<8x8xf32>
    %123 = tpu.matmul %120, %122, %cst_130 {dimension_numbers = #tpu.dot_dimension_numbers<[1], [0], [0], [1], [0, 0, 1, 1], [], []>} : vector<8x8xf32>, vector<8x8xf32>, vector<8x8xf32> -> vector<8x8xf32>
    %124 = vector.broadcast %119 : vector<1x8xf32> to vector<8x8xf32>
    %125 = arith.addf %124, %123 : vector<8x8xf32>
    %c1_131 = arith.constant 1 : index
    %c0_132 = arith.constant 0 : index
    %126 = tpu.strided_load %arg10[%c1_131, %c0_132] {strides = array<i32: 2, 1>} : memref<32x8xf32, #tpu.memory_space<vmem>>, vector<8x8xf32>
    %c1_133 = arith.constant 1 : index
    %c0_134 = arith.constant 0 : index
    %c0_135 = arith.constant 0 : index
    %127 = vector.load %arg5[%c1_133, %c0_134, %c0_135] : memref<17x8x8xf32, #tpu.memory_space<vmem>>, vector<1x8x8xf32>
    %128 = vector.shape_cast %127 : vector<1x8x8xf32> to vector<8x8xf32>
    %cst_136 = arith.constant dense<0.000000e+00> : vector<8x8xf32>
    %129 = tpu.matmul %126, %128, %cst_136 {dimension_numbers = #tpu.dot_dimension_numbers<[1], [0], [0], [1], [0, 0, 1, 1], [], []>} : vector<8x8xf32>, vector<8x8xf32>, vector<8x8xf32> -> vector<8x8xf32>
    %130 = arith.addf %125, %129 : vector<8x8xf32>
    %c2_137 = arith.constant 2 : index
    %c0_138 = arith.constant 0 : index
    %131 = tpu.strided_load %arg10[%c2_137, %c0_138] {strides = array<i32: 2, 1>} : memref<32x8xf32, #tpu.memory_space<vmem>>, vector<8x8xf32>
    %c2_139 = arith.constant 2 : index
    %c0_140 = arith.constant 0 : index
    %c0_141 = arith.constant 0 : index
    %132 = vector.load %arg5[%c2_139, %c0_140, %c0_141] : memref<17x8x8xf32, #tpu.memory_space<vmem>>, vector<1x8x8xf32>
    %133 = vector.shape_cast %132 : vector<1x8x8xf32> to vector<8x8xf32>
    %cst_142 = arith.constant dense<0.000000e+00> : vector<8x8xf32>
    %134 = tpu.matmul %131, %133, %cst_142 {dimension_numbers = #tpu.dot_dimension_numbers<[1], [0], [0], [1], [0, 0, 1, 1], [], []>} : vector<8x8xf32>, vector<8x8xf32>, vector<8x8xf32> -> vector<8x8xf32>
    %135 = arith.addf %130, %134 : vector<8x8xf32>
    %c3_143 = arith.constant 3 : index
    %c0_144 = arith.constant 0 : index
    %136 = tpu.strided_load %arg10[%c3_143, %c0_144] {strides = array<i32: 2, 1>} : memref<32x8xf32, #tpu.memory_space<vmem>>, vector<8x8xf32>
    %c3_145 = arith.constant 3 : index
    %c0_146 = arith.constant 0 : index
    %c0_147 = arith.constant 0 : index
    %137 = vector.load %arg5[%c3_145, %c0_146, %c0_147] : memref<17x8x8xf32, #tpu.memory_space<vmem>>, vector<1x8x8xf32>
    %138 = vector.shape_cast %137 : vector<1x8x8xf32> to vector<8x8xf32>
    %cst_148 = arith.constant dense<0.000000e+00> : vector<8x8xf32>
    %139 = tpu.matmul %136, %138, %cst_148 {dimension_numbers = #tpu.dot_dimension_numbers<[1], [0], [0], [1], [0, 0, 1, 1], [], []>} : vector<8x8xf32>, vector<8x8xf32>, vector<8x8xf32> -> vector<8x8xf32>
    %140 = arith.addf %135, %139 : vector<8x8xf32>
    %c4_149 = arith.constant 4 : index
    %c0_150 = arith.constant 0 : index
    %141 = tpu.strided_load %arg10[%c4_149, %c0_150] {strides = array<i32: 2, 1>} : memref<32x8xf32, #tpu.memory_space<vmem>>, vector<8x8xf32>
    %c4_151 = arith.constant 4 : index
    %c0_152 = arith.constant 0 : index
    %c0_153 = arith.constant 0 : index
    %142 = vector.load %arg5[%c4_151, %c0_152, %c0_153] : memref<17x8x8xf32, #tpu.memory_space<vmem>>, vector<1x8x8xf32>
    %143 = vector.shape_cast %142 : vector<1x8x8xf32> to vector<8x8xf32>
    %cst_154 = arith.constant dense<0.000000e+00> : vector<8x8xf32>
    %144 = tpu.matmul %141, %143, %cst_154 {dimension_numbers = #tpu.dot_dimension_numbers<[1], [0], [0], [1], [0, 0, 1, 1], [], []>} : vector<8x8xf32>, vector<8x8xf32>, vector<8x8xf32> -> vector<8x8xf32>
    %145 = arith.addf %140, %144 : vector<8x8xf32>
    %c5_155 = arith.constant 5 : index
    %c0_156 = arith.constant 0 : index
    %146 = tpu.strided_load %arg10[%c5_155, %c0_156] {strides = array<i32: 2, 1>} : memref<32x8xf32, #tpu.memory_space<vmem>>, vector<8x8xf32>
    %c5_157 = arith.constant 5 : index
    %c0_158 = arith.constant 0 : index
    %c0_159 = arith.constant 0 : index
    %147 = vector.load %arg5[%c5_157, %c0_158, %c0_159] : memref<17x8x8xf32, #tpu.memory_space<vmem>>, vector<1x8x8xf32>
    %148 = vector.shape_cast %147 : vector<1x8x8xf32> to vector<8x8xf32>
    %cst_160 = arith.constant dense<0.000000e+00> : vector<8x8xf32>
    %149 = tpu.matmul %146, %148, %cst_160 {dimension_numbers = #tpu.dot_dimension_numbers<[1], [0], [0], [1], [0, 0, 1, 1], [], []>} : vector<8x8xf32>, vector<8x8xf32>, vector<8x8xf32> -> vector<8x8xf32>
    %150 = arith.addf %145, %149 : vector<8x8xf32>
    %c6_161 = arith.constant 6 : index
    %c0_162 = arith.constant 0 : index
    %151 = tpu.strided_load %arg10[%c6_161, %c0_162] {strides = array<i32: 2, 1>} : memref<32x8xf32, #tpu.memory_space<vmem>>, vector<8x8xf32>
    %c6_163 = arith.constant 6 : index
    %c0_164 = arith.constant 0 : index
    %c0_165 = arith.constant 0 : index
    %152 = vector.load %arg5[%c6_163, %c0_164, %c0_165] : memref<17x8x8xf32, #tpu.memory_space<vmem>>, vector<1x8x8xf32>
    %153 = vector.shape_cast %152 : vector<1x8x8xf32> to vector<8x8xf32>
    %cst_166 = arith.constant dense<0.000000e+00> : vector<8x8xf32>
    %154 = tpu.matmul %151, %153, %cst_166 {dimension_numbers = #tpu.dot_dimension_numbers<[1], [0], [0], [1], [0, 0, 1, 1], [], []>} : vector<8x8xf32>, vector<8x8xf32>, vector<8x8xf32> -> vector<8x8xf32>
    %155 = arith.addf %150, %154 : vector<8x8xf32>
    %c7_167 = arith.constant 7 : index
    %c0_168 = arith.constant 0 : index
    %156 = tpu.strided_load %arg10[%c7_167, %c0_168] {strides = array<i32: 2, 1>} : memref<32x8xf32, #tpu.memory_space<vmem>>, vector<8x8xf32>
    %c7_169 = arith.constant 7 : index
    %c0_170 = arith.constant 0 : index
    %c0_171 = arith.constant 0 : index
    %157 = vector.load %arg5[%c7_169, %c0_170, %c0_171] : memref<17x8x8xf32, #tpu.memory_space<vmem>>, vector<1x8x8xf32>
    %158 = vector.shape_cast %157 : vector<1x8x8xf32> to vector<8x8xf32>
    %cst_172 = arith.constant dense<0.000000e+00> : vector<8x8xf32>
    %159 = tpu.matmul %156, %158, %cst_172 {dimension_numbers = #tpu.dot_dimension_numbers<[1], [0], [0], [1], [0, 0, 1, 1], [], []>} : vector<8x8xf32>, vector<8x8xf32>, vector<8x8xf32> -> vector<8x8xf32>
    %160 = arith.addf %155, %159 : vector<8x8xf32>
    %c8_173 = arith.constant 8 : index
    %c0_174 = arith.constant 0 : index
    %161 = tpu.strided_load %arg10[%c8_173, %c0_174] {strides = array<i32: 2, 1>} : memref<32x8xf32, #tpu.memory_space<vmem>>, vector<8x8xf32>
    %c8_175 = arith.constant 8 : index
    %c0_176 = arith.constant 0 : index
    %c0_177 = arith.constant 0 : index
    %162 = vector.load %arg5[%c8_175, %c0_176, %c0_177] : memref<17x8x8xf32, #tpu.memory_space<vmem>>, vector<1x8x8xf32>
    %163 = vector.shape_cast %162 : vector<1x8x8xf32> to vector<8x8xf32>
    %cst_178 = arith.constant dense<0.000000e+00> : vector<8x8xf32>
    %164 = tpu.matmul %161, %163, %cst_178 {dimension_numbers = #tpu.dot_dimension_numbers<[1], [0], [0], [1], [0, 0, 1, 1], [], []>} : vector<8x8xf32>, vector<8x8xf32>, vector<8x8xf32> -> vector<8x8xf32>
    %165 = arith.addf %160, %164 : vector<8x8xf32>
    %c9_179 = arith.constant 9 : index
    %c0_180 = arith.constant 0 : index
    %166 = tpu.strided_load %arg10[%c9_179, %c0_180] {strides = array<i32: 2, 1>} : memref<32x8xf32, #tpu.memory_space<vmem>>, vector<8x8xf32>
    %c9_181 = arith.constant 9 : index
    %c0_182 = arith.constant 0 : index
    %c0_183 = arith.constant 0 : index
    %167 = vector.load %arg5[%c9_181, %c0_182, %c0_183] : memref<17x8x8xf32, #tpu.memory_space<vmem>>, vector<1x8x8xf32>
    %168 = vector.shape_cast %167 : vector<1x8x8xf32> to vector<8x8xf32>
    %cst_184 = arith.constant dense<0.000000e+00> : vector<8x8xf32>
    %169 = tpu.matmul %166, %168, %cst_184 {dimension_numbers = #tpu.dot_dimension_numbers<[1], [0], [0], [1], [0, 0, 1, 1], [], []>} : vector<8x8xf32>, vector<8x8xf32>, vector<8x8xf32> -> vector<8x8xf32>
    %170 = arith.addf %165, %169 : vector<8x8xf32>
    %c10_185 = arith.constant 10 : index
    %c0_186 = arith.constant 0 : index
    %171 = tpu.strided_load %arg10[%c10_185, %c0_186] {strides = array<i32: 2, 1>} : memref<32x8xf32, #tpu.memory_space<vmem>>, vector<8x8xf32>
    %c10_187 = arith.constant 10 : index
    %c0_188 = arith.constant 0 : index
    %c0_189 = arith.constant 0 : index
    %172 = vector.load %arg5[%c10_187, %c0_188, %c0_189] : memref<17x8x8xf32, #tpu.memory_space<vmem>>, vector<1x8x8xf32>
    %173 = vector.shape_cast %172 : vector<1x8x8xf32> to vector<8x8xf32>
    %cst_190 = arith.constant dense<0.000000e+00> : vector<8x8xf32>
    %174 = tpu.matmul %171, %173, %cst_190 {dimension_numbers = #tpu.dot_dimension_numbers<[1], [0], [0], [1], [0, 0, 1, 1], [], []>} : vector<8x8xf32>, vector<8x8xf32>, vector<8x8xf32> -> vector<8x8xf32>
    %175 = arith.addf %170, %174 : vector<8x8xf32>
    %c11_191 = arith.constant 11 : index
    %c0_192 = arith.constant 0 : index
    %176 = tpu.strided_load %arg10[%c11_191, %c0_192] {strides = array<i32: 2, 1>} : memref<32x8xf32, #tpu.memory_space<vmem>>, vector<8x8xf32>
    %c11_193 = arith.constant 11 : index
    %c0_194 = arith.constant 0 : index
    %c0_195 = arith.constant 0 : index
    %177 = vector.load %arg5[%c11_193, %c0_194, %c0_195] : memref<17x8x8xf32, #tpu.memory_space<vmem>>, vector<1x8x8xf32>
    %178 = vector.shape_cast %177 : vector<1x8x8xf32> to vector<8x8xf32>
    %cst_196 = arith.constant dense<0.000000e+00> : vector<8x8xf32>
    %179 = tpu.matmul %176, %178, %cst_196 {dimension_numbers = #tpu.dot_dimension_numbers<[1], [0], [0], [1], [0, 0, 1, 1], [], []>} : vector<8x8xf32>, vector<8x8xf32>, vector<8x8xf32> -> vector<8x8xf32>
    %180 = arith.addf %175, %179 : vector<8x8xf32>
    %c12_197 = arith.constant 12 : index
    %c0_198 = arith.constant 0 : index
    %181 = tpu.strided_load %arg10[%c12_197, %c0_198] {strides = array<i32: 2, 1>} : memref<32x8xf32, #tpu.memory_space<vmem>>, vector<8x8xf32>
    %c12_199 = arith.constant 12 : index
    %c0_200 = arith.constant 0 : index
    %c0_201 = arith.constant 0 : index
    %182 = vector.load %arg5[%c12_199, %c0_200, %c0_201] : memref<17x8x8xf32, #tpu.memory_space<vmem>>, vector<1x8x8xf32>
    %183 = vector.shape_cast %182 : vector<1x8x8xf32> to vector<8x8xf32>
    %cst_202 = arith.constant dense<0.000000e+00> : vector<8x8xf32>
    %184 = tpu.matmul %181, %183, %cst_202 {dimension_numbers = #tpu.dot_dimension_numbers<[1], [0], [0], [1], [0, 0, 1, 1], [], []>} : vector<8x8xf32>, vector<8x8xf32>, vector<8x8xf32> -> vector<8x8xf32>
    %185 = arith.addf %180, %184 : vector<8x8xf32>
    %c13_203 = arith.constant 13 : index
    %c0_204 = arith.constant 0 : index
    %186 = tpu.strided_load %arg10[%c13_203, %c0_204] {strides = array<i32: 2, 1>} : memref<32x8xf32, #tpu.memory_space<vmem>>, vector<8x8xf32>
    %c13_205 = arith.constant 13 : index
    %c0_206 = arith.constant 0 : index
    %c0_207 = arith.constant 0 : index
    %187 = vector.load %arg5[%c13_205, %c0_206, %c0_207] : memref<17x8x8xf32, #tpu.memory_space<vmem>>, vector<1x8x8xf32>
    %188 = vector.shape_cast %187 : vector<1x8x8xf32> to vector<8x8xf32>
    %cst_208 = arith.constant dense<0.000000e+00> : vector<8x8xf32>
    %189 = tpu.matmul %186, %188, %cst_208 {dimension_numbers = #tpu.dot_dimension_numbers<[1], [0], [0], [1], [0, 0, 1, 1], [], []>} : vector<8x8xf32>, vector<8x8xf32>, vector<8x8xf32> -> vector<8x8xf32>
    %190 = arith.addf %185, %189 : vector<8x8xf32>
    %c14_209 = arith.constant 14 : index
    %c0_210 = arith.constant 0 : index
    %191 = tpu.strided_load %arg10[%c14_209, %c0_210] {strides = array<i32: 2, 1>} : memref<32x8xf32, #tpu.memory_space<vmem>>, vector<8x8xf32>
    %c14_211 = arith.constant 14 : index
    %c0_212 = arith.constant 0 : index
    %c0_213 = arith.constant 0 : index
    %192 = vector.load %arg5[%c14_211, %c0_212, %c0_213] : memref<17x8x8xf32, #tpu.memory_space<vmem>>, vector<1x8x8xf32>
    %193 = vector.shape_cast %192 : vector<1x8x8xf32> to vector<8x8xf32>
    %cst_214 = arith.constant dense<0.000000e+00> : vector<8x8xf32>
    %194 = tpu.matmul %191, %193, %cst_214 {dimension_numbers = #tpu.dot_dimension_numbers<[1], [0], [0], [1], [0, 0, 1, 1], [], []>} : vector<8x8xf32>, vector<8x8xf32>, vector<8x8xf32> -> vector<8x8xf32>
    %195 = arith.addf %190, %194 : vector<8x8xf32>
    %c15_215 = arith.constant 15 : index
    %c0_216 = arith.constant 0 : index
    %196 = tpu.strided_load %arg10[%c15_215, %c0_216] {strides = array<i32: 2, 1>} : memref<32x8xf32, #tpu.memory_space<vmem>>, vector<8x8xf32>
    %c15_217 = arith.constant 15 : index
    %c0_218 = arith.constant 0 : index
    %c0_219 = arith.constant 0 : index
    %197 = vector.load %arg5[%c15_217, %c0_218, %c0_219] : memref<17x8x8xf32, #tpu.memory_space<vmem>>, vector<1x8x8xf32>
    %198 = vector.shape_cast %197 : vector<1x8x8xf32> to vector<8x8xf32>
    %cst_220 = arith.constant dense<0.000000e+00> : vector<8x8xf32>
    %199 = tpu.matmul %196, %198, %cst_220 {dimension_numbers = #tpu.dot_dimension_numbers<[1], [0], [0], [1], [0, 0, 1, 1], [], []>} : vector<8x8xf32>, vector<8x8xf32>, vector<8x8xf32> -> vector<8x8xf32>
    %200 = arith.addf %195, %199 : vector<8x8xf32>
    %c16_221 = arith.constant 16 : index
    %c0_222 = arith.constant 0 : index
    %201 = tpu.strided_load %arg10[%c16_221, %c0_222] {strides = array<i32: 2, 1>} : memref<32x8xf32, #tpu.memory_space<vmem>>, vector<8x8xf32>
    %c16_223 = arith.constant 16 : index
    %c0_224 = arith.constant 0 : index
    %c0_225 = arith.constant 0 : index
    %202 = vector.load %arg5[%c16_223, %c0_224, %c0_225] : memref<17x8x8xf32, #tpu.memory_space<vmem>>, vector<1x8x8xf32>
    %203 = vector.shape_cast %202 : vector<1x8x8xf32> to vector<8x8xf32>
    %cst_226 = arith.constant dense<0.000000e+00> : vector<8x8xf32>
    %204 = tpu.matmul %201, %203, %cst_226 {dimension_numbers = #tpu.dot_dimension_numbers<[1], [0], [0], [1], [0, 0, 1, 1], [], []>} : vector<8x8xf32>, vector<8x8xf32>, vector<8x8xf32> -> vector<8x8xf32>
    %205 = arith.addf %200, %204 : vector<8x8xf32>
    %c0_227 = arith.constant 0 : index
    %c0_228 = arith.constant 0 : index
    %c0_229 = arith.constant 0 : index
    %206 = tpu.strided_load %arg3[%c0_227, %c0_228, %c0_229] {strides = array<i32: 1, 2, 1>} : memref<1x16x4xf32, #tpu.memory_space<vmem>>, vector<1x8x4xf32>
    %207 = vector.shape_cast %206 : vector<1x8x4xf32> to vector<8x4xf32>
    %c0_230 = arith.constant 0 : index
    %c1_231 = arith.constant 1 : index
    %c0_232 = arith.constant 0 : index
    %208 = tpu.strided_load %arg3[%c0_230, %c1_231, %c0_232] {strides = array<i32: 1, 2, 1>} : memref<1x16x4xf32, #tpu.memory_space<vmem>>, vector<1x8x4xf32>
    %209 = vector.shape_cast %208 : vector<1x8x4xf32> to vector<8x4xf32>
    %210 = arith.maximumf %207, %209 : vector<8x4xf32>
    %c0_233 = arith.constant 0 : index
    %c0_234 = arith.constant 0 : index
    %211 = vector.load %arg6[%c0_233, %c0_234] : memref<4x8xf32, #tpu.memory_space<vmem>>, vector<4x8xf32>
    %cst_235 = arith.constant dense<0.000000e+00> : vector<8x8xf32>
    %212 = tpu.matmul %210, %211, %cst_235 {dimension_numbers = #tpu.dot_dimension_numbers<[1], [0], [0], [1], [0, 0, 1, 1], [], []>} : vector<8x4xf32>, vector<4x8xf32>, vector<8x8xf32> -> vector<8x8xf32>
    %c2_236 = arith.constant 2 : index
    %c0_237 = arith.constant 0 : index
    %213 = vector.load %arg7[%c2_236, %c0_237] : memref<8x8xf32, #tpu.memory_space<vmem>>, vector<1x8xf32>
    %214 = vector.broadcast %213 : vector<1x8xf32> to vector<8x8xf32>
    %215 = arith.addf %212, %214 : vector<8x8xf32>
    %216 = arith.addf %205, %215 : vector<8x8xf32>
    %c0_238 = arith.constant 0 : index
    %c0_239 = arith.constant 0 : index
    %c0_240 = arith.constant 0 : index
    %217 = vector.load %arg9[%c0_238, %c0_239, %c0_240] : memref<1x8x8xf32, #tpu.memory_space<vmem>>, vector<1x8x8xf32>
    %218 = vector.shape_cast %217 : vector<1x8x8xf32> to vector<8x8xf32>
    %219 = vector.shape_cast %216 : vector<8x8xf32> to vector<1x8x8xf32>
    tpu.vector_store %arg9[%c0_238, %c0_239, %c0_240], %219 {strides = array<i32>} : memref<1x8x8xf32, #tpu.memory_space<vmem>>, vector<1x8x8xf32>,
    %c3_241 = arith.constant 3 : index
    %c0_242 = arith.constant 0 : index
    %220 = vector.load %arg7[%c3_241, %c0_242] : memref<8x8xf32, #tpu.memory_space<vmem>>, vector<1x8xf32>
    %221 = vector.broadcast %220 : vector<1x8xf32> to vector<8x8xf32>
    %222 = arith.mulf %216, %221 : vector<8x8xf32>
    %c4_243 = arith.constant 4 : index
    %c0_244 = arith.constant 0 : index
    %223 = vector.load %arg7[%c4_243, %c0_244] : memref<8x8xf32, #tpu.memory_space<vmem>>, vector<1x8xf32>
    %224 = vector.broadcast %223 : vector<1x8xf32> to vector<8x8xf32>
    %225 = arith.addf %222, %224 : vector<8x8xf32>
    %cst_245 = arith.constant 0.000000e+00 : f32
    %226 = vector.broadcast %cst_245 : f32 to vector<8x8xf32>
    %227 = arith.maximumf %225, %226 : vector<8x8xf32>
    %c0_246 = arith.constant 0 : index
    %c0_247 = arith.constant 0 : index
    %c0_248 = arith.constant 0 : index
    %228 = vector.load %arg8[%c0_246, %c0_247, %c0_248] : memref<1x8x8xf32, #tpu.memory_space<vmem>>, vector<1x8x8xf32>
    %229 = vector.shape_cast %228 : vector<1x8x8xf32> to vector<8x8xf32>
    %230 = vector.shape_cast %227 : vector<8x8xf32> to vector<1x8x8xf32>
    tpu.vector_store %arg8[%c0_246, %c0_247, %c0_248], %230 {strides = array<i32>} : memref<1x8x8xf32, #tpu.memory_space<vmem>>, vector<1x8x8xf32>,
    return
  }
  func.func @transform_0(%arg0: i32, %arg1: i32) -> (i32, i32, i32, i32) {
    %c0_i32 = arith.constant 0 : i32
    %c0_i32_0 = arith.constant 0 : i32
    %c0_i32_1 = arith.constant 0 : i32
    return %arg0, %arg1, %c0_i32, %c0_i32_0 : i32, i32, i32, i32
  }
  func.func @transform_1(%arg0: i32, %arg1: i32) -> (i32, i32, i32) {
    %c0_i32 = arith.constant 0 : i32
    %c0_i32_0 = arith.constant 0 : i32
    return %arg0, %arg1, %c0_i32 : i32, i32, i32
  }
  func.func @transform_2(%arg0: i32, %arg1: i32) -> (i32, i32, i32) {
    %c0_i32 = arith.constant 0 : i32
    %c0_i32_0 = arith.constant 0 : i32
    %c0_i32_1 = arith.constant 0 : i32
    %c0_i32_2 = arith.constant 0 : i32
    return %c0_i32, %c0_i32_0, %c0_i32_1 : i32, i32, i32
  }
  func.func @transform_3(%arg0: i32, %arg1: i32) -> (i32, i32, i32) {
    %c0_i32 = arith.constant 0 : i32
    %c0_i32_0 = arith.constant 0 : i32
    %c0_i32_1 = arith.constant 0 : i32
    %c0_i32_2 = arith.constant 0 : i32
    return %c0_i32, %c0_i32_0, %c0_i32_1 : i32, i32, i32
  }
  func.func @transform_4(%arg0: i32, %arg1: i32) -> (i32, i32) {
    %c0_i32 = arith.constant 0 : i32
    %c0_i32_0 = arith.constant 0 : i32
    %c0_i32_1 = arith.constant 0 : i32
    return %c0_i32, %c0_i32_0 : i32, i32
  }
  func.func @transform_5(%arg0: i32, %arg1: i32) -> (i32, i32) {
    %c0_i32 = arith.constant 0 : i32
    %c0_i32_0 = arith.constant 0 : i32
    %c0_i32_1 = arith.constant 0 : i32
    return %c0_i32, %c0_i32_0 : i32, i32
  }
  func.func @transform_6(%arg0: i32, %arg1: i32) -> (i32, i32, i32) {
    %c0_i32 = arith.constant 0 : i32
    %c0_i32_0 = arith.constant 0 : i32
    return %arg0, %arg1, %c0_i32 : i32, i32, i32
  }
  func.func @transform_7(%arg0: i32, %arg1: i32) -> (i32, i32, i32) {
    %c0_i32 = arith.constant 0 : i32
    %c0_i32_0 = arith.constant 0 : i32
    return %arg0, %arg1, %c0_i32 : i32, i32, i32
  }
}

</mosaic_0001>

<bundles_post_ra>
// kernel: tpu_custom_call.1
= control target key start
LH: loop header
LB: loop body
LE: loop exit
PB: predicated region body
PF: predicated region fallthrough
CT: control target
= control target key end

     0   :  { %s4600_s24 = smov 0   ;;  %s4602_s25 = smov 0   ;;  %s5090_s0 = inlined_call_operand.vmem [shape: f32[2,2,48,4], index: 0, kind: input, shape index: {}]   ;;  %s5091_s1 = inlined_call_operand.vmem [shape: f32[2,32,4], index: 1, kind: input, shape index: {}]   ;;  %s5092_s2 = inlined_call_operand.vmem [shape: f32[17,4,8], index: 2, kind: input, shape index: {}]   ;;  %s5093_s3 = inlined_call_operand.vmem [shape: f32[17,8,8], index: 3, kind: input, shape index: {}]   ;;  %s5094_s4 = inlined_call_operand.vmem [shape: f32[4,8], index: 4, kind: input, shape index: {}]   ;;  %s5095_s5 = inlined_call_operand.vmem [shape: f32[8,8], index: 5, kind: input, shape index: {}]   ;;  %s5096_s6 = inlined_call_operand.vmem [shape: f32[2,16,8], index: 6, kind: output, shape index: {0}]   ;;  %s5097_s7 = inlined_call_operand.vmem [shape: f32[2,16,8], index: 7, kind: output, shape index: {1}]  }
   0x1   :  { %s4604_s26 = smov 0   ;;  %s4606_s27 = smov 0  }
   0x2   :  { %s4608_s28 = smov 0  }
   0x3 LB: > { %s27_s29 = sadd.s32 1, %s4548_s26  ;;  %s30_s30 = sadd.s32 1, %s4552_s27  ;;  %s4556_s28 = sphi %s4608_s28, %s18_s28   ;;  %s4552_s27 = sphi %s4606_s27, %s5101_s27   ;;  %s4548_s26 = sphi %s4604_s26, %s5100_s26   ;;  %s4544_s25 = sphi %s4602_s25, %s5099_s25   ;;  %s4540_s24 = sphi %s4600_s24, %s5098_s24  }
   0x4   : > { %p28_p0 = scmp.ge.s32.totalorder %s27_s29, 2  ;;  %p3872_p1 = scmp.ge.s32.totalorder %s4556_s28, 1 }
   0x5   : > { %p279_p2 = scmp.lt.s32.totalorder %s4556_s28, 5 }
   0x6   : > { %s5103_s29 = smov (%p28_p0, %s27_s29), 0  ;;  %s5105_s30 = smov (!%p28_p0, %s30_s30), %s4552_s27 }
   0x7   : > { %p280_p3 = pnand %p3872_p1, %p279_p2  ;;  %p32_p4 = scmp.ge.s32.totalorder %s5105_s30, 2 }
   0x8   : > { %vm394_vm0 = vcmask (!%p280_p3), 1043456   ;;  %v3904_v0 = vld [vmem:[%s5092_s2 + $0x10] sm:$0xf] (!%p280_p3)  ;;  %p335_p5 = scmp.lt.s32.totalorder (!%p280_p3), %s4544_s25, 1  ;;  %p337_p6 = scmp.lt.s32.totalorder (!%p280_p3), %s4540_s24, 1  ;;  %vm381_vm1 = vcmask (!%p280_p3), 31744  }
   0x9   : > { %s5107_s30 = smov (%p32_p4, %s5105_s30), 0  ;;  %283 = sbr.rel (%p280_p3) target bundleno = 705 (0x2c1), region = 44 }
   0xa   : > { %4180 = vmatprep.subr.msk.mxu0 (!%p280_p3), %vm394_vm0, %v3904_v0  ;;  %v3910_v1 = vld [vmem:[%s5092_s2 + $0x14] sm:$0xf] (!%p280_p3)  ;;  %v3881_v2 = vld [vmem:[%s5092_s2 + $0x4] sm:$0xf] (!%p280_p3)  ;;  %v374_v3 = vld [vmem:[%s5092_s2] sm:$0xf] (!%p280_p3) }
   0xb   : > { %4181 = vmatpush3.msk.msra.mxu0 (!%p280_p3), %vm394_vm0, %v3904_v0  ;;  %4148 = vmatprep.subr.msk.mxu1 (!%p280_p3), %vm394_vm0, %v3881_v2  ;;  %v3916_v7 = vld [vmem:[%s5092_s2 + $0x18] sm:$0xf] (!%p280_p3)  ;;  %v3922_v13 = vld [vmem:[%s5092_s2 + $0x1c] sm:$0xf] (!%p280_p3)  ;;  %v3892_v20 = vld [vmem:[%s5092_s2 + $0x8] sm:$0xf] (!%p280_p3)  ;;  %v2244_v0 = vlaneseq (!%p280_p3) }
   0xc   : > { %4188 = vmatprep.subr.msk.mxu0 (!%p280_p3), %vm394_vm0, %v3910_v1  ;;  %4149 = vmatpush3.msk.msra.mxu1 (!%p280_p3), %vm394_vm0, %v3881_v2  ;;  %v3928_v23 = vld [vmem:[%s5092_s2 + $0x20] sm:$0xf] (!%p280_p3)  ;;  %v3898_v30 = vld [vmem:[%s5092_s2 + $0xc] sm:$0xf] (!%p280_p3)  ;;  %v3934_v33 = vld [vmem:[%s5092_s2 + $0x24] sm:$0xf] (!%p280_p3) }
   0xd   : > { %4156 = vmatprep.subr.msk.mxu1 (!%p280_p3), %vm394_vm0, %v374_v3  ;;  %v3940_v39 = vld [vmem:[%s5092_s2 + $0x28] sm:$0xf] (!%p280_p3)  ;;  %v3946_v44 = vld [vmem:[%s5092_s2 + $0x2c] sm:$0xf] (!%p280_p3)  ;;  %v3952_v46 = vld [vmem:[%s5092_s2 + $0x30] sm:$0xf] (!%p280_p3) }
   0xe   : > { %v3958_v48 = vld [vmem:[%s5092_s2 + $0x34] sm:$0xf] (!%p280_p3)  ;;  %v3964_v50 = vld [vmem:[%s5092_s2 + $0x38] sm:$0xf] (!%p280_p3)  ;;  %v3970_v52 = vld [vmem:[%s5092_s2 + $0x3c] sm:$0xf] (!%p280_p3) }
   0xf   : > { %v3976_v54 = vld [vmem:[%s5092_s2 + $0x40] sm:$0xf] (!%p280_p3)  ;;  %v4558_v59 = vmov (!%p280_p3), 0.0   ;;  %vm4559_vm2 = vmmov (!%p280_p3), 0   ;;  %vm2278_vm8 = vcmask (!%p280_p3), 64512   ;;  %s3874_s9 = sshll.u32 (!%p280_p3), %s4540_s24, 1 }
  0x10   : > { %s5109_s25 = smov (!%p335_p5, %s4544_s25), 1  ;;  %v2285_v58 = vld [vmem:[%s5093_s3] sm:$0xff]  ;;  %p347_p7 = scmp.lt.s32.totalorder %s3874_s9, 3 }
  0x11   : > { %s4644_s12 = scalar_select %p337_p6, %s4540_s24, 1 }
  0x12   : > { %s4475_s15 = smul.u32 12, %s5109_s25  ;;  %s5111_s9 = smov (!%p347_p7, %s3874_s9), 3 }
  0x13   : > { %s4474_s18 = smul.u32 6, %s4644_s12  ;;  %s3875_s13 = sshll.u32 %s5109_s25, 2 }
  0x14   : > { %s3877_s22 = sshll.u32 %s5109_s25, 1 }
  0x15   : > { %s341_s19 = sadd.s32 %s4475_s15, %s4474_s18 }
  0x16   : > { %s3873_s20 = sshll.u32 %s341_s19, 3 }
  0x17   : > { %s4661_s23 = scalar_lea.vmem %s5090_s0, %s3873_s20 }
  0x18   : > { %v803_v4 = vld [vmem:[%s4661_s23 + $0x4] sm:$0xff]  ;;  %v4665_v5 = vld [vmem:[%s4661_s23 + $0xc] sm:$0xff]  ;;  %v4668_v6 = vld [vmem:[%s4661_s23 + $0x14] sm:$0xff] }
  0x19   : > { %4182 = vmatprep.mubr.msk.f32.mxu0 %vm381_vm1, %v803_v4  ;;  %v4680_v8 = vld [vmem:[%s4661_s23 + $0x1c] sm:$0xff]  ;;  %v913_v9 = vld [vmem:[%s4661_s23 + $0x5] sm:$0xff]  ;;  %v4688_v10 = vld [vmem:[%s4661_s23 + $0xd] sm:$0xff] }
  0x1a   : > { %4183 = vmatmul.mubr.msk.f32.vlgmr.msra.gmra.mrb[0].mxu0 %vm381_vm1, %v4665_v5  ;;  %v4691_v11 = vld [vmem:[%s4661_s23 + $0x15] sm:$0xff]  ;;  %v375_v12 = vld [vmem:[%s4661_s23 + $0x1] sm:$0xff]  ;;  %v4698_v14 = vld [vmem:[%s4661_s23 + $0x9] sm:$0xff] }
  0x1b   : > { %4189 = vmatpush3.msk.msra.mxu0 %vm394_vm0, %v3910_v1  ;;  %4185 = vmatprep.mubr.msk.f32.mxu0 %vm381_vm1, %v4668_v6  ;;  %v4709_v15 = vld [vmem:[%s4661_s23 + $0x1d] sm:$0xff]  ;;  %v4712_v16 = vld [vmem:[%s4661_s23 + $0x11] sm:$0xff]  ;;  %v1023_v17 = vld [vmem:[%s4661_s23 + $0x6] sm:$0xff]  ;;  %v2245_v1 = vshrl.u32 %v2244_v0, 7 }
  0x1c   : > { %4196 = vmatprep.subr.msk.mxu0 %vm394_vm0, %v3916_v7  ;;  %4150 = vmatprep.mubr.msk.f32.mxu1 %vm381_vm1, %v375_v12  ;;  %v370_v18 = vld [vmem:[%s4661_s23] sm:$0xff]  ;;  %v4732_v21 = vld [vmem:[%s4661_s23 + $0xe] sm:$0xff]  ;;  %v4736_v22 = vld [vmem:[%s4661_s23 + $0x16] sm:$0xff] }
  0x1d   : > { %4151 = vmatmul.mubr.msk.f32.vlgmr.msra.gmra.mrb[0].mxu1 %vm381_vm1, %v4698_v14  ;;  %v4720_v19 = vld [vmem:[%s4661_s23 + $0x19] sm:$0xff]  ;;  %v1243_v24 = vld [vmem:[%s4661_s23 + $0x8] sm:$0xff]  ;;  %v4753_v26 = vld [vmem:[%s4661_s23 + $0x10] sm:$0xff]  ;;  %v2246_v2 = vadd.s32 8, %v2245_v1 }
  0x1e   : > { %4186 = vmatmul.mubr.msk.f32.gmra.mrb[2].mxu0 %vm381_vm1, %v4680_v8  ;;  %4153 = vmatprep.mubr.msk.f32.mxu1 %vm381_vm1, %v4712_v16  ;;  %v4750_v25 = vld [vmem:[%s4661_s23 + $0x1e] sm:$0xff]  ;;  %v1133_v27 = vld [vmem:[%s4661_s23 + $0x7] sm:$0xff]  ;;  %v4773_v31 = vld [vmem:[%s4661_s23 + $0xf] sm:$0xff] }
  0x1f   : > { %4190 = vmatprep.mubr.msk.f32.mxu0 %vm381_vm1, %v913_v9  ;;  %4157 = vmatpush3.msk.msra.mxu1 %vm394_vm0, %v374_v3  ;;  %v583_v28 = vld [vmem:[%s4661_s23 + $0x2] sm:$0xff]  ;;  %v4761_v29 = vld [vmem:[%s4661_s23 + $0x18] sm:$0xff]  ;;  %v1463_v34 = vld [vmem:[%s4661_s23 + $0xa] sm:$0xff] }
  0x20   : > { %4164 = vmatprep.subr.msk.mxu1 %vm394_vm0, %v3892_v20  ;;  %v4777_v32 = vld [vmem:[%s4661_s23 + $0x17] sm:$0xff]  ;;  %v4791_v35 = vld [vmem:[%s4661_s23 + $0x1f] sm:$0xff]  ;;  %v1573_v40 = vld [vmem:[%s4661_s23 + $0xb] sm:$0xff] }
  0x21   : > { %4154 = vmatmul.mubr.msk.f32.gmra.mrb[2].mxu1 %vm381_vm1, %v4720_v19  ;;  %v1464_v36 = vld [vmem:[%s4661_s23 + $0x12] sm:$0xff]  ;;  %v693_v37 = vld [vmem:[%s4661_s23 + $0x3] sm:$0xff]  ;;  %v1465_v38 = vld [vmem:[%s4661_s23 + $0x1a] sm:$0xff] }
  0x22   : > { %4191 = vmatmul.mubr.msk.f32.vlgmr.msra.gmra.mrb[0].mxu0 %vm381_vm1, %v4688_v10  ;;  %4158 = vmatprep.mubr.msk.f32.mxu1 %vm381_vm1, %v370_v18  ;;  %v4815_v41 = vld [vmem:[%s4661_s23 + $0x20] sm:$0xff]  ;;  %v1574_v42 = vld [vmem:[%s4661_s23 + $0x13] sm:$0xff]  ;;  %v2126_v57 = vld [vmem:[%s4661_s23 + $0x28] sm:$0xff] }
  0x23   : > { %4197 = vmatpush3.msk.msra.mxu0 %vm394_vm0, %v3916_v7  ;;  %4193 = vmatprep.mubr.msk.f32.mxu0 %vm381_vm1, %v4691_v11  ;;  %v1575_v43 = vld [vmem:[%s4661_s23 + $0x1b] sm:$0xff]  ;;  %v1576_v49 = vld [vmem:[%s4661_s23 + $0x23] sm:$0xff]  ;;  %v2247_v7 = vadd.s32 16, %v2245_v1 }
  0x24   : > { %4204 = vmatprep.subr.msk.mxu0 %vm394_vm0, %v3922_v13  ;;  %v1356_v45 = vld [vmem:[%s4661_s23 + $0x21] sm:$0xff] }
  0x25   : > { %4159 = vmatmul.mubr.msk.f32.vlgmr.msra.gmra.mrb[0].mxu1 %vm381_vm1, %v1243_v24  ;;  %v1466_v47 = vld [vmem:[%s4661_s23 + $0x22] sm:$0xff] }
  0x26   : > { %4194 = vmatmul.mubr.msk.f32.gmra.mrb[2].mxu0 %vm381_vm1, %v4709_v15  ;;  %4161 = vmatprep.mubr.msk.f32.mxu1 %vm381_vm1, %v4753_v26  ;;  %v1686_v51 = vld [vmem:[%s4661_s23 + $0x24] sm:$0xff] }
  0x27   : > { %4198 = vmatprep.mubr.msk.f32.mxu0 %vm381_vm1, %v1023_v17  ;;  %4165 = vmatpush3.msk.msra.mxu1 %vm394_vm0, %v3892_v20  ;;  %v1796_v53 = vld [vmem:[%s4661_s23 + $0x25] sm:$0xff] }
  0x28   : > { %4172 = vmatprep.subr.msk.mxu1 %vm394_vm0, %v3898_v30  ;;  %v1906_v55 = vld [vmem:[%s4661_s23 + $0x26] sm:$0xff] }
  0x29   : > { %4162 = vmatmul.mubr.msk.f32.gmra.mrb[2].mxu1 %vm381_vm1, %v4761_v29  ;;  %v2016_v56 = vld [vmem:[%s4661_s23 + $0x27] sm:$0xff]  ;;  %s3983_s23 = sshll.u32 %s4540_s24, 4  ;;  %s350_s24 = sadd.s32 %s3875_s13, %s5111_s9 }
  0x2a   : > { %4199 = vmatmul.mubr.msk.f32.vlgmr.msra.gmra.mrb[0].mxu0 %vm381_vm1, %v4732_v21  ;;  %4166 = vmatprep.mubr.msk.f32.mxu1 %vm381_vm1, %v583_v28  ;;  %s3984_s8 = sadd.s32 4294967288, %s3983_s23  ;;  %s3876_s16 = sshll.u32 %s350_s24, 3 }
  0x2b   : > { %4205 = vmatpush3.msk.msra.mxu0 %vm394_vm0, %v3922_v13  ;;  %4201 = vmatprep.mubr.msk.f32.mxu0 %vm381_vm1, %v4736_v22  ;;  %v2249_v3 = vstv %s3984_s8  ;;  %s352_s21 = scalar_lea.vmem %s5091_s1, %s3876_s16  ;;  %s359_s23 = sadd.s32 %s3877_s22, %s4644_s12 }
  0x2c   : > { %4212 = vmatprep.subr.msk.mxu0 %vm394_vm0, %v3928_v23  ;;  %v2251_v4 = vadd.s32 %v2249_v3, %v2246_v2  ;;  %v4020_v2 = vld [vmem:[%s5095_s5 + $0x2] ss:$0 sm:$0xff]  ;;  %s3878_s13 = sshll.u32 %s359_s23, 3 }
  0x2d   : > { %4167 = vmatmul.mubr.msk.f32.vlgmr.msra.gmra.mrb[0].mxu1 %vm381_vm1, %v1463_v34  ;;  %s369_s24 = scalar_lea.vmem %s5097_s7, %s3878_s13  ;;  %s361_s20 = scalar_lea.vmem %s5096_s6, %s3878_s13 }
  0x2e   : > { %4202 = vmatmul.mubr.msk.f32.gmra.mrb[2].mxu0 %vm381_vm1, %v4750_v25  ;;  %4169 = vmatprep.mubr.msk.f32.mxu1 %vm381_vm1, %v1464_v36  ;;  %vm2255_vm3 = vcmp.ge.s32.totalorder %v2251_v4, 0  ;;  %vm2259_vm4 = vcmp.lt.s32.totalorder %v2251_v4, 32  ;;  %v4023_v4 = vld [vmem:[%s5095_s5 + $0x3] ss:$0 sm:$0xff] }
  0x2f   : > { %4206 = vmatprep.mubr.msk.f32.mxu0 %vm381_vm1, %v1133_v27  ;;  %4173 = vmatpush3.msk.msra.mxu1 %vm394_vm0, %v3898_v30  ;;  %vm2263_vm7 = vmand %vm2255_vm3, %vm2259_vm4  ;;  %v3987_v27 = vld [vmem:[%s5093_s3 + $0x8] sm:$0xff] }
  0x30   : > { %4284 = vmatprep.subr.mxu1 %v4558_v59 }
  0x31   : > { %4170 = vmatmul.mubr.msk.f32.gmra.mrb[2].mxu1 %vm381_vm1, %v1465_v38 }
  0x32   : > { %4207 = vmatmul.mubr.msk.f32.vlgmr.msra.gmra.mrb[0].mxu0 %vm381_vm1, %v4773_v31  ;;  %4174 = vmatprep.mubr.msk.f32.mxu1 %vm381_vm1, %v693_v37  ;;  %v3997_v37 = vld [vmem:[%s5093_s3 + $0x30] sm:$0xff] }
  0x33   : > { %4213 = vmatpush3.msk.msra.mxu0 %vm394_vm0, %v3928_v23  ;;  %4209 = vmatprep.mubr.msk.f32.mxu0 %vm381_vm1, %v4777_v32 }
  0x34   : > { %4220 = vmatprep.subr.msk.mxu0 %vm394_vm0, %v3934_v33 }
  0x35   : > { %4175 = vmatmul.mubr.msk.f32.vlgmr.msra.gmra.mrb[0].mxu1 %vm381_vm1, %v1573_v40 }
  0x36   : > { %4210 = vmatmul.mubr.msk.f32.gmra.mrb[2].mxu0 %vm381_vm1, %v4791_v35  ;;  %4177 = vmatprep.mubr.msk.f32.mxu1 %vm381_vm1, %v1574_v42 }
  0x37   : > { %4214 = vmatprep.mubr.msk.f32.mxu0 %vm381_vm1, %v1243_v24  ;;  %4285 = vmatpush3.msra.mxu1 %v2285_v58 }
  0x38   : > { %4289 = vmatprep.subr.mxu1 %v4558_v59 }
  0x39   : > { %4178 = vmatmul.mubr.msk.f32.gmra.mrb[2].mxu1 %vm381_vm1, %v1575_v43 }
  0x3a   : > { %4215 = vmatmul.mubr.msk.f32.vlgmr.msra.gmra.mrb[0].mxu0 %vm381_vm1, %v4753_v26  ;;  %4286 = vmatprep.mubr.msk.f32.mxu1 %vm4559_vm2, %v4558_v59 }
  0x3b   : > { %4221 = vmatpush3.msk.msra.mxu0 %vm394_vm0, %v3934_v33  ;;  %4217 = vmatprep.mubr.msk.f32.mxu0 %vm381_vm1, %v4761_v29  ;;  %v3993_v33 = vld [vmem:[%s5093_s3 + $0x20] sm:$0xff] }
  0x3c   : > { %4228 = vmatprep.subr.msk.mxu0 %vm394_vm0, %v3940_v39 }
  0x3e   : > { %4218 = vmatmul.mubr.msk.f32.gmra.mrb[2].mxu0 %vm381_vm1, %v4815_v41 }
  0x3f   : > { %4222 = vmatprep.mubr.msk.f32.mxu0 %vm381_vm1, %v4698_v14 }
  0x42   : > { %4223 = vmatmul.mubr.msk.f32.vlgmr.msra.gmra.mrb[0].mxu0 %vm381_vm1, %v4712_v16 }
  0x43   : > { %4229 = vmatpush3.msk.msra.mxu0 %vm394_vm0, %v3940_v39  ;;  %4225 = vmatprep.mubr.msk.f32.mxu0 %vm381_vm1, %v4720_v19  ;;  %v3999_v39 = vld [vmem:[%s5093_s3 + $0x38] sm:$0xff] }
  0x44   : > { %4236 = vmatprep.subr.msk.mxu0 %vm394_vm0, %v3946_v44 }
  0x46   : > { %4226 = vmatmul.mubr.msk.f32.gmra.mrb[2].mxu0 %vm381_vm1, %v1356_v45  ;;  %v4005_v45 = vld [vmem:[%s5093_s3 + $0x50] sm:$0xff] }
  0x47   : > { %4230 = vmatprep.mubr.msk.f32.mxu0 %vm381_vm1, %v1463_v34 }
  0x4a   : > { %4231 = vmatmul.mubr.msk.f32.vlgmr.msra.gmra.mrb[0].mxu0 %vm381_vm1, %v1464_v36 }
  0x4b   : > { %4237 = vmatpush3.msk.msra.mxu0 %vm394_vm0, %v3946_v44  ;;  %4233 = vmatprep.mubr.msk.f32.mxu0 %vm381_vm1, %v1465_v38 }
  0x4c   : > { %4244 = vmatprep.subr.msk.mxu0 %vm394_vm0, %v3952_v46 }
  0x4e   : > { %4234 = vmatmul.mubr.msk.f32.gmra.mrb[2].mxu0 %vm381_vm1, %v1466_v47  ;;  %v4007_v47 = vld [vmem:[%s5093_s3 + $0x58] sm:$0xff] }
  0x4f   : > { %4238 = vmatprep.mubr.msk.f32.mxu0 %vm381_vm1, %v1573_v40 }
  0x52   : > { %4239 = vmatmul.mubr.msk.f32.vlgmr.msra.gmra.mrb[0].mxu0 %vm381_vm1, %v1574_v42 }
  0x53   : > { %4245 = vmatpush3.msk.msra.mxu0 %vm394_vm0, %v3952_v46  ;;  %4241 = vmatprep.mubr.msk.f32.mxu0 %vm381_vm1, %v1575_v43  ;;  %v4003_v43 = vld [vmem:[%s5093_s3 + $0x48] sm:$0xff] }
  0x54   : > { %4252 = vmatprep.subr.msk.mxu0 %vm394_vm0, %v3958_v48 }
  0x56   : > { %4242 = vmatmul.mubr.msk.f32.gmra.mrb[2].mxu0 %vm381_vm1, %v1576_v49  ;;  %v4009_v49 = vld [vmem:[%s5093_s3 + $0x60] sm:$0xff] }
  0x57   : > { %4246 = vmatprep.mubr.msk.f32.mxu0 %vm381_vm1, %v4665_v5  ;;  %v2248_v5 = vadd.s32 24, %v2245_v1 }
  0x5a   : > { %4247 = vmatmul.mubr.msk.f32.vlgmr.msra.gmra.mrb[0].mxu0 %vm381_vm1, %v4668_v6  ;;  %v2250_v6 = vadd.s32 %v2249_v3, %v2245_v1  ;;  %v3986_v1 = vld [vmem:[%s5095_s5 + $0x1] ss:$0 sm:$0xff] }
  0x5b   : > { %4253 = vmatpush3.msk.msra.mxu0 %vm394_vm0, %v3958_v48  ;;  %4249 = vmatprep.mubr.msk.f32.mxu0 %vm381_vm1, %v4680_v8  ;;  %v2253_v8 = vadd.s32 %v2249_v3, %v2248_v5 }
  0x5c   : > { %4260 = vmatprep.subr.msk.mxu0 %vm394_vm0, %v3964_v50  ;;  %vm2254_vm5 = vcmp.ge.s32.totalorder %v2250_v6, 0  ;;  %vm2258_vm6 = vcmp.lt.s32.totalorder %v2250_v6, 32 }
  0x5d   : > { %vm2262_vm9 = vmand %vm2254_vm5, %vm2258_vm6  ;;  %vm2257_vm10 = vcmp.ge.s32.totalorder %v2253_v8, 0  ;;  %vm2261_vm11 = vcmp.lt.s32.totalorder %v2253_v8, 32 }
  0x5e   : > { %4250 = vmatmul.mubr.msk.f32.gmra.mrb[2].mxu0 %vm381_vm1, %v1686_v51  ;;  %vm2265_vm14 = vmand %vm2257_vm10, %vm2261_vm11  ;;  %v4011_v51 = vld [vmem:[%s5093_s3 + $0x68] sm:$0xff] }
  0x5f   : > { %4254 = vmatprep.mubr.msk.f32.mxu0 %vm381_vm1, %v4688_v10  ;;  %v3982_v10 = vld [vmem:[%s5095_s5] ss:$0 sm:$0xff] }
  0x62   : > { %4255 = vmatmul.mubr.msk.f32.vlgmr.msra.gmra.mrb[0].mxu0 %vm381_vm1, %v4691_v11  ;;  %v2252_v11 = vadd.s32 %v2249_v3, %v2247_v7  ;;  %v4378_v3 = vadd.f32 %v4020_v2, %v3986_v1  ;;  %v4024_v7 = vld [vmem:[%s5095_s5 + $0x4] ss:$0 sm:$0xff] }
  0x63   : > { %4261 = vmatpush3.msk.msra.mxu0 %vm394_vm0, %v3964_v50  ;;  %4257 = vmatprep.mubr.msk.f32.mxu0 %vm381_vm1, %v4709_v15 }
  0x64   : > { %4268 = vmatprep.subr.msk.mxu0 %vm394_vm0, %v3970_v52  ;;  %vm2256_vm12 = vcmp.ge.s32.totalorder %v2252_v11, 0  ;;  %vm2260_vm13 = vcmp.lt.s32.totalorder %v2252_v11, 32 }
  0x65   : > { %vm2264_vm15 = vmand %vm2256_vm12, %vm2260_vm13 }
  0x66   : > { %4258 = vmatmul.mubr.msk.f32.gmra.mrb[2].mxu0 %vm381_vm1, %v1796_v53  ;;  %v4013_v53 = vld [vmem:[%s5093_s3 + $0x70] sm:$0xff] }
  0x67   : > { %4262 = vmatprep.mubr.msk.f32.mxu0 %vm381_vm1, %v4732_v21 }
  0x6a   : > { %4263 = vmatmul.mubr.msk.f32.vlgmr.msra.gmra.mrb[0].mxu0 %vm381_vm1, %v4736_v22 }
  0x6b   : > { %4269 = vmatpush3.msk.msra.mxu0 %vm394_vm0, %v3970_v52  ;;  %4265 = vmatprep.mubr.msk.f32.mxu0 %vm381_vm1, %v4750_v25 }
  0x6c   : > { %4276 = vmatprep.subr.msk.mxu0 %vm394_vm0, %v3976_v54 }
  0x6e   : > { %4266 = vmatmul.mubr.msk.f32.gmra.mrb[2].mxu0 %vm381_vm1, %v1906_v55  ;;  %v4015_v55 = vld [vmem:[%s5093_s3 + $0x78] sm:$0xff] }
  0x6f   : > { %4270 = vmatprep.mubr.msk.f32.mxu0 %vm381_vm1, %v4773_v31  ;;  %v3991_v31 = vld [vmem:[%s5093_s3 + $0x18] sm:$0xff] }
  0x72   : > { %4271 = vmatmul.mubr.msk.f32.vlgmr.msra.gmra.mrb[0].mxu0 %vm381_vm1, %v4777_v32 }
  0x73   : > { %4277 = vmatpush3.msk.msra.mxu0 %vm394_vm0, %v3976_v54  ;;  %4273 = vmatprep.mubr.msk.f32.mxu0 %vm381_vm1, %v4791_v35  ;;  %v3995_v35 = vld [vmem:[%s5093_s3 + $0x28] sm:$0xff] }
  0x76   : > { %4274 = vmatmul.mubr.msk.f32.gmra.mrb[2].mxu0 %vm381_vm1, %v2016_v56 }
  0x77   : > { %4278 = vmatprep.mubr.msk.f32.mxu0 %vm381_vm1, %v4753_v26 }
  0x7a   : > { %4279 = vmatmul.mubr.msk.f32.vlgmr.msra.gmra.mrb[0].mxu0 %vm381_vm1, %v4761_v29  ;;  %v3989_v29 = vld [vmem:[%s5093_s3 + $0x10] sm:$0xff] }
  0x7b   : > { %4281 = vmatprep.mubr.msk.f32.mxu0 %vm381_vm1, %v4815_v41  ;;  %v4001_v41 = vld [vmem:[%s5093_s3 + $0x40] sm:$0xff] }
  0x7e   : > { %4282 = vmatmul.mubr.msk.f32.gmra.mrb[2].mxu0 %vm381_vm1, %v2126_v57  ;;  %v4017_v57 = vld [vmem:[%s5093_s3 + $0x80] sm:$0xff] }
 0x108   : > { %v4176_v60 = vpop.f32.mrb[0].mxu1 }
 0x109   : > { %v780_v61 = vpop.f32.mrb[1].mxu1 }
 0x10c   : > { %v4179_v62 = vpop.f32.mrb[2].mxu1 }
 0x10d   : > { %v790_v63 = vpop.f32.mrb[3].mxu1 }
 0x14d   : > { %v4280_v9 = vpop.f32.mrb[0].mxu0 }
 0x14e   : > { %v4374_v12 = vadd.f32 %v4280_v9, %v4176_v60  ;;  %v2210_v13 = vpop.f32.mrb[1].mxu0  ;;  %v3616_v60 = vld [vmem:[%s5094_s4] sm:$0xf] }
 0x14f   : > { %v4375_v14 = vadd.f32 %v2210_v13, %v780_v61 }
 0x150   : > { %v2239_v15 = vadd.f32 %v4374_v12, %v3982_v10 }
 0x151   : > { %v2238_v16 = vadd.f32 %v4375_v14, %v3982_v10  ;;  %v4283_v17 = vpop.f32.mrb[2].mxu0 }
 0x152   : > { %v2275_v18 = vsel %vm2263_vm7, %v2239_v15, 0.0  ;;  %v4376_v19 = vadd.f32 %v4283_v17, %v4179_v62  ;;  %v2220_v20 = vpop.f32.mrb[3].mxu0  ;;  %v3612_v62 = vld [vmem:[%s352_s21] ss:$2 sm:$0xff] }
 0x153   : > { %2280 = vst.msk [vmem:[#allocation2 + $0x8] sm:$0xff] %vm2278_vm8, %v2275_v18  ;;  %v2274_v21 = vsel %vm2262_vm9, %v2238_v16, 0.0  ;;  %v4377_v22 = vadd.f32 %v2220_v20, %v790_v63  ;;  %v4019_v63 = vld [vmem:[%s352_s21 + $0x1] ss:$2 sm:$0xff] }
 0x154   : > { %2279 = vst.msk [vmem:[#allocation2] sm:$0xff] %vm2278_vm8, %v2274_v21  ;;  %v2241_v23 = vadd.f32 %v4376_v19, %v3982_v10  ;;  %v3615_v0 = vmax.f32 %v3612_v62, %v4019_v63 }
 0x155   : > { %v2240_v24 = vadd.f32 %v4377_v22, %v3982_v10 }
 0x156   : > { %v2277_v25 = vsel %vm2265_vm14, %v2241_v23, 0.0 }
 0x157   : > { %2282 = vst.msk [vmem:[#allocation2 + $0x18] sm:$0xff] %vm2278_vm8, %v2277_v25  ;;  %v2276_v26 = vsel %vm2264_vm15, %v2240_v24, 0.0 }
 0x158   : > { %2281 = vst.msk [vmem:[#allocation2 + $0x10] sm:$0xff] %vm2278_vm8, %v2276_v26 }
 0x15b   : > { %v2284_v28 = vld [vmem:[#allocation2] ss:$2 sm:$0xff]  ;;  %v2365_v30 = vld [vmem:[#allocation2 + $0x1] ss:$2 sm:$0xff] }
 0x15c   : > { %4287 = vmatmul.mubr.msk.f32.vlgmr.msra.gmra.mrb[4].mxu1 %vm2278_vm8, %v2284_v28 }
 0x15d   : > { %4290 = vmatpush3.msra.mxu1 %v3987_v27  ;;  %4291 = vmatprep.mubr.msk.f32.mxu1 %vm4559_vm2, %v4558_v59 }
 0x15e   : > { %4294 = vmatprep.subr.mxu1 %v4558_v59 }
 0x15f   : > { %v2443_v32 = vld [vmem:[#allocation2 + $0x2] ss:$2 sm:$0xff]  ;;  %v2521_v34 = vld [vmem:[#allocation2 + $0x3] ss:$2 sm:$0xff] }
 0x160   : > { %v2599_v36 = vld [vmem:[#allocation2 + $0x4] ss:$2 sm:$0xff]  ;;  %v2677_v38 = vld [vmem:[#allocation2 + $0x5] ss:$2 sm:$0xff] }
 0x161   : > { %v2755_v40 = vld [vmem:[#allocation2 + $0x6] ss:$2 sm:$0xff]  ;;  %v2833_v42 = vld [vmem:[#allocation2 + $0x7] ss:$2 sm:$0xff] }
 0x162   : > { %v2911_v44 = vld [vmem:[#allocation2 + $0x8] ss:$2 sm:$0xff]  ;;  %v2989_v46 = vld [vmem:[#allocation2 + $0x9] ss:$2 sm:$0xff] }
 0x163   : > { %v3067_v48 = vld [vmem:[#allocation2 + $0xa] ss:$2 sm:$0xff]  ;;  %v3145_v50 = vld [vmem:[#allocation2 + $0xb] ss:$2 sm:$0xff] }
 0x164   : > { %4292 = vmatmul.mubr.msk.f32.vlgmr.msra.gmra.mrb[4].mxu1 %vm2278_vm8, %v2365_v30  ;;  %v3223_v52 = vld [vmem:[#allocation2 + $0xc] ss:$2 sm:$0xff]  ;;  %v3301_v54 = vld [vmem:[#allocation2 + $0xd] ss:$2 sm:$0xff] }
 0x165   : > { %4295 = vmatpush3.msra.mxu1 %v3989_v29  ;;  %4296 = vmatprep.mubr.msk.f32.mxu1 %vm4559_vm2, %v4558_v59  ;;  %v3379_v56 = vld [vmem:[#allocation2 + $0xe] ss:$2 sm:$0xff]  ;;  %v3457_v58 = vld [vmem:[#allocation2 + $0xf] ss:$2 sm:$0xff] }
 0x166   : > { %4299 = vmatprep.subr.mxu1 %v4558_v59  ;;  %v3535_v61 = vld [vmem:[#allocation2 + $0x10] ss:$2 sm:$0xff] }
 0x16c   : > { %4297 = vmatmul.mubr.msk.f32.vlgmr.msra.gmra.mrb[4].mxu1 %vm2278_vm8, %v2443_v32 }
 0x16d   : > { %4300 = vmatpush3.msra.mxu1 %v3991_v31  ;;  %4301 = vmatprep.mubr.msk.f32.mxu1 %vm4559_vm2, %v4558_v59 }
 0x16e   : > { %4304 = vmatprep.subr.mxu1 %v4558_v59 }
 0x174   : > { %4302 = vmatmul.mubr.msk.f32.vlgmr.msra.gmra.mrb[4].mxu1 %vm2278_vm8, %v2521_v34 }
 0x175   : > { %4305 = vmatpush3.msra.mxu1 %v3993_v33  ;;  %4306 = vmatprep.mubr.msk.f32.mxu1 %vm4559_vm2, %v4558_v59 }
 0x176   : > { %4309 = vmatprep.subr.mxu1 %v4558_v59 }
 0x17c   : > { %4307 = vmatmul.mubr.msk.f32.vlgmr.msra.gmra.mrb[4].mxu1 %vm2278_vm8, %v2599_v36 }
 0x17d   : > { %4310 = vmatpush3.msra.mxu1 %v3995_v35  ;;  %4311 = vmatprep.mubr.msk.f32.mxu1 %vm4559_vm2, %v4558_v59 }
 0x17e   : > { %4314 = vmatprep.subr.mxu1 %v4558_v59 }
 0x184   : > { %4312 = vmatmul.mubr.msk.f32.vlgmr.msra.gmra.mrb[4].mxu1 %vm2278_vm8, %v2677_v38 }
 0x185   : > { %4315 = vmatpush3.msra.mxu1 %v3997_v37  ;;  %4316 = vmatprep.mubr.msk.f32.mxu1 %vm4559_vm2, %v4558_v59 }
 0x186   : > { %4319 = vmatprep.subr.mxu1 %v4558_v59 }
 0x18c   : > { %4317 = vmatmul.mubr.msk.f32.vlgmr.msra.gmra.mrb[4].mxu1 %vm2278_vm8, %v2755_v40 }
 0x18d   : > { %4320 = vmatpush3.msra.mxu1 %v3999_v39  ;;  %4321 = vmatprep.mubr.msk.f32.mxu1 %vm4559_vm2, %v4558_v59 }
 0x18e   : > { %4324 = vmatprep.subr.mxu1 %v4558_v59 }
 0x194   : > { %4322 = vmatmul.mubr.msk.f32.vlgmr.msra.gmra.mrb[4].mxu1 %vm2278_vm8, %v2833_v42 }
 0x195   : > { %4325 = vmatpush3.msra.mxu1 %v4001_v41  ;;  %4326 = vmatprep.mubr.msk.f32.mxu1 %vm4559_vm2, %v4558_v59 }
 0x196   : > { %4329 = vmatprep.subr.mxu1 %v4558_v59 }
 0x19c   : > { %4327 = vmatmul.mubr.msk.f32.vlgmr.msra.gmra.mrb[4].mxu1 %vm2278_vm8, %v2911_v44 }
 0x19d   : > { %4330 = vmatpush3.msra.mxu1 %v4003_v43  ;;  %4331 = vmatprep.mubr.msk.f32.mxu1 %vm4559_vm2, %v4558_v59 }
 0x19e   : > { %4334 = vmatprep.subr.mxu1 %v4558_v59 }
 0x1a4   : > { %4332 = vmatmul.mubr.msk.f32.vlgmr.msra.gmra.mrb[4].mxu1 %vm2278_vm8, %v2989_v46 }
 0x1a5   : > { %4335 = vmatpush3.msra.mxu1 %v4005_v45  ;;  %4336 = vmatprep.mubr.msk.f32.mxu1 %vm4559_vm2, %v4558_v59 }
 0x1a6   : > { %4339 = vmatprep.subr.mxu1 %v4558_v59 }
 0x1ac   : > { %4337 = vmatmul.mubr.msk.f32.vlgmr.msra.gmra.mrb[4].mxu1 %vm2278_vm8, %v3067_v48 }
 0x1ad   : > { %4340 = vmatpush3.msra.mxu1 %v4007_v47  ;;  %4341 = vmatprep.mubr.msk.f32.mxu1 %vm4559_vm2, %v4558_v59 }
 0x1ae   : > { %4344 = vmatprep.subr.mxu1 %v4558_v59 }
 0x1b4   : > { %4342 = vmatmul.mubr.msk.f32.vlgmr.msra.gmra.mrb[4].mxu1 %vm2278_vm8, %v3145_v50 }
 0x1b5   : > { %4345 = vmatpush3.msra.mxu1 %v4009_v49  ;;  %4346 = vmatprep.mubr.msk.f32.mxu1 %vm4559_vm2, %v4558_v59 }
 0x1b6   : > { %4349 = vmatprep.subr.mxu1 %v4558_v59 }
 0x1bc   : > { %4347 = vmatmul.mubr.msk.f32.vlgmr.msra.gmra.mrb[4].mxu1 %vm2278_vm8, %v3223_v52 }
 0x1bd   : > { %4350 = vmatpush3.msra.mxu1 %v4011_v51  ;;  %4351 = vmatprep.mubr.msk.f32.mxu1 %vm4559_vm2, %v4558_v59 }
 0x1be   : > { %4354 = vmatprep.subr.mxu1 %v4558_v59 }
 0x1c4   : > { %4352 = vmatmul.mubr.msk.f32.vlgmr.msra.gmra.mrb[4].mxu1 %vm2278_vm8, %v3301_v54 }
 0x1c5   : > { %4355 = vmatpush3.msra.mxu1 %v4013_v53  ;;  %4356 = vmatprep.mubr.msk.f32.mxu1 %vm4559_vm2, %v4558_v59 }
 0x1c6   : > { %4359 = vmatprep.subr.mxu1 %v4558_v59 }
 0x1cc   : > { %4357 = vmatmul.mubr.msk.f32.vlgmr.msra.gmra.mrb[4].mxu1 %vm2278_vm8, %v3379_v56 }
 0x1cd   : > { %4360 = vmatpush3.msra.mxu1 %v4015_v55  ;;  %4361 = vmatprep.mubr.msk.f32.mxu1 %vm4559_vm2, %v4558_v59 }
 0x1ce   : > { %4364 = vmatprep.subr.mxu1 %v4558_v59 }
 0x1d4   : > { %4362 = vmatmul.mubr.msk.f32.vlgmr.msra.gmra.mrb[4].mxu1 %vm2278_vm8, %v3457_v58 }
 0x1d5   : > { %4365 = vmatpush3.msra.mxu1 %v4017_v57  ;;  %4366 = vmatprep.mubr.msk.f32.mxu1 %vm4559_vm2, %v4558_v59 }
 0x1d6   : > { %4369 = vmatprep.subr.mxu1 %v4558_v59 }
 0x1dc   : > { %4367 = vmatmul.mubr.msk.f32.vlgmr.msra.gmra.mrb[4].mxu1 %vm2278_vm8, %v3535_v61 }
 0x1dd   : > { %4370 = vmatpush3.msk.msra.mxu1 %vm394_vm0, %v3616_v60  ;;  %4371 = vmatprep.mubr.msk.f32.mxu1 %vm4559_vm2, %v4558_v59 }
 0x1e4   : > { %4372 = vmatmul.mubr.msk.f32.vlgmr.msra.gmra.mrb[4].mxu1 %vm381_vm1, %v3615_v0 }
 0x2b7   : > { %v3694_v59 = vpop.f32.mrb[4].mxu1 }
 0x2b8   : > { %v4379_v5 = vadd.f32 %v4378_v3, %v3694_v59  ;;  %v4373_v6 = vpop.f32.mrb[5].mxu1 }
 0x2ba   : > { %3699 = vst.msk [vmem:[%s369_s24] sm:$0xff] %vm2278_vm8, %v4379_v5  ;;  %v3705_v8 = vmul.f32 %v4379_v5, %v4023_v4 }
 0x2bc   : > { %v3711_v9 = vadd.f32 %v4024_v7, %v3705_v8 }
 0x2be   : > { %v3712_v10 = vmax.f32 %v3711_v9, 0.0 }
 0x2c0   : > { %3713 = vst.msk [vmem:[%s361_s20] sm:$0xff] %vm2278_vm8, %v3712_v10 }
 0x2c1 PF: > { %s18_s28 = sadd.s32 1, %s4556_s28   ;;  %s5098_s24 = smov %s4548_s26 }
 0x2c2   : > { %p15_p8 = scmp.ge.s32.totalorder %s18_s28, 6   ;;  %s5099_s25 = smov %s4552_s27 }
 0x2c3   : > { %s5100_s26 = smov %s5103_s29  ;;  %s5101_s27 = smov %s5107_s30 }
 0x2c4   :  { %17 = sbr.rel (!%p15_p8) target bundleno = 3 (0x3), region = 138 }

</bundles_post_ra>
